<compile_context>
chip_gen: v6e
topology: v6e:2x2x1
jax: 0.10.0
libtpu: 0.0.40
codegen_flags: <defaults>
</compile_context>

<pallas_src>
import math
import jax
import jax.numpy as jnp
from jax import lax
from jax.experimental import pallas as pl
from jax.experimental.pallas import tpu as pltpu

N_EMBD = 128
N_HEAD = 2
HEAD_DIM = N_EMBD // N_HEAD          # 64
HIDDEN = 4 * N_EMBD                  # 512
LN_EPS = 1e-5


def _layer_norm(x, w, b):
    # x: (R, E); w, b: (1, E)
    mu = jnp.mean(x, axis=-1, keepdims=True)
    xc = x - mu
    var = jnp.mean(xc * xc, axis=-1, keepdims=True)
    inv = lax.rsqrt(var + LN_EPS)
    return xc * inv * w + b


def _gelu_exact(x):
    # nn.GELU() default is the exact (erf) formulation (keep module semantics).
    return 0.5 * x * (1.0 + lax.erf(x * (1.0 / math.sqrt(2.0))))


def block_kernel(x_ref,
                 small_ref,              # (6, E) packed: ln1w, ln1b, ln2w, ln2b, bo, b2
                 wqkv_ref, bqkv_ref,     # (E, 3E) bf16 (q cols pre-scaled), (1, 3E) f32
                 wo_ref,                 # (E, E) bf16 (pre-transposed)
                 w1_ref, b1_ref,         # (E, 4E) bf16, (1, 4E) f32
                 w2_ref,                 # (4E, E) bf16
                 o_ref):
    Bb, T, E = x_ref.shape
    R = Bb * T
    x = x_ref[...].reshape(R, E)                                   # leading-dim merge only

    ln1w = small_ref[0:1, :]
    ln1b = small_ref[1:2, :]
    ln2w = small_ref[2:3, :]
    ln2b = small_ref[3:4, :]
    bo   = small_ref[4:5, :]
    b2   = small_ref[5:6, :]

    # ---- ln1 (shared for q, k, v since attn(self, self, self)) ----
    h1 = _layer_norm(x, ln1w, ln1b)                                # (R, E) f32

    # ---- fused QKV projection: bf16 MXU inputs, f32 accumulation ----
    qkv = jnp.dot(h1.astype(jnp.bfloat16), wqkv_ref[...],
                  preferred_element_type=jnp.float32) + bqkv_ref[...]   # (R, 3E) f32

    # ---- multi-head scaled dot-product attention (static loop over 2 heads) ----
    # Per-head (R,64)@(64,E) out-projection accumulation: Wo^T is sliced along
    # the sublane axis (8-aligned -> free), no lane-axis concat of head outputs.
    acc = jnp.zeros((R, E), jnp.float32)
    for h in range(N_HEAD):
        lo = h * HEAD_DIM
        qh = qkv[:, lo:lo + HEAD_DIM].reshape(Bb, T, HEAD_DIM)
        kh = qkv[:, E + lo:E + lo + HEAD_DIM].reshape(Bb, T, HEAD_DIM)
        vh = qkv[:, 2 * E + lo:2 * E + lo + HEAD_DIM].reshape(Bb, T, HEAD_DIM)
        # 1/sqrt(head_dim) already folded into the q columns of wqkv/bqkv.
        s = jnp.einsum('bqd,bkd->bqk',
                       qh.astype(jnp.bfloat16), kh.astype(jnp.bfloat16),
                       preferred_element_type=jnp.float32)         # (Bb, T, T) f32
        s = s - jnp.max(s, axis=-1, keepdims=True)
        p = jnp.exp(s)
        p = p * pl.reciprocal(jnp.sum(p, axis=-1, keepdims=True), approx=True)
        oh = jnp.einsum('bqk,bkd->bqd',
                        p.astype(jnp.bfloat16), vh.astype(jnp.bfloat16),
                        preferred_element_type=jnp.float32)        # (Bb, T, HD)
        acc = acc + jnp.dot(oh.reshape(R, HEAD_DIM).astype(jnp.bfloat16),
                            wo_ref[lo:lo + HEAD_DIM, :],
                            preferred_element_type=jnp.float32)    # (R, E)
    attn = acc + bo
    # TODO(synk): attention-weight dropout (p=0.1) is inference-mode identity here.
    # TODO(synk): for long T (esp. v7x's 64 MiB VMEM) tile the KV dimension with
    #             an online-softmax (flash-style) running max/sum instead of
    #             materializing the full (Bb, T, T) scores/probs per head.

    x1 = x + attn

    # ---- MLP ----
    h2 = _layer_norm(x1, ln2w, ln2b)                               # (R, E) f32
    m = jnp.dot(h2.astype(jnp.bfloat16), w1_ref[...],
                preferred_element_type=jnp.float32) + b1_ref[...]  # (R, 4E) f32
    m = _gelu_exact(m)
    y = jnp.dot(m.astype(jnp.bfloat16), w2_ref[...],
                preferred_element_type=jnp.float32) + b2           # (R, E) f32
    # TODO(synk): nn.Dropout(0.1) after fc2 is inference-mode identity here.

    o_ref[...] = (x1 + y).reshape(Bb, T, E)


def _choose_block_batch(B, T, max_rows=2048):
    """Largest divisor Bb of B with Bb*T <= max_rows.

    No forced grid split: at small B*T we want a single grid step (zero
    pipeline / per-step overhead, maximal MXU M fill).  Once B*T exceeds
    max_rows the grid naturally gets >= 2 steps, each with up to ~2048 rows,
    which also gives v7x's two TensorCores something useful to split.
    """
    best = 1
    for bb in range(1, B + 1):
        if B % bb:
            continue
        if bb > 1 and bb * T > max_rows:
            break
        best = bb
    return best


def block_forward(x, params):
    B, T, E = x.shape
    assert E == N_EMBD
    Bb = _choose_block_batch(B, T)
    grid = (B // Bb,)

    # ---- wrapper-side (trace-time) weight preparation ----
    scale = 1.0 / math.sqrt(HEAD_DIM)
    col_scale = jnp.concatenate(
        [jnp.full((E,), scale, jnp.float32), jnp.ones((2 * E,), jnp.float32)])
    wqkv_t = (params["wqkv"].T * col_scale[None, :]).astype(jnp.bfloat16)  # (E, 3E)
    bqkv = params["bqkv"] * col_scale[None, :]                              # (1, 3E) f32
    wo_t = params["wo"].T.astype(jnp.bfloat16)                              # (E, E)
    w1_t = params["w1"].T.astype(jnp.bfloat16)                              # (E, 4E)
    w2_t = params["w2"].T.astype(jnp.bfloat16)                              # (4E, E)

    # Pack the six (1, E) vectors into one (6, E) operand -> one DMA, one block.
    small = jnp.concatenate(
        [params["ln1_w"], params["ln1_b"], params["ln2_w"], params["ln2_b"],
         params["bo"], params["b2"]], axis=0)                               # (6, E) f32

    def const2d(shape):
        # Constant index_map: same block every grid step (never re-fetched).
        # NOTE: could use pipeline_mode=pl.Buffered(1) to drop the second
        # buffer; left at default since the grid is typically a single step.
        return pl.BlockSpec(shape, lambda b: (0, 0))

    in_specs = [
        pl.BlockSpec((Bb, T, E), lambda b: (b, 0, 0)),   # x
        const2d((6, E)),                                 # packed LN weights + biases
        const2d((E, 3 * E)), const2d((1, 3 * E)),        # in_proj W^T (bf16), b (scaled)
        const2d((E, E)),                                 # out_proj W^T (bf16)
        const2d((E, HIDDEN)), const2d((1, HIDDEN)),      # mlp fc1 W^T (bf16), b
        const2d((HIDDEN, E)),                            # mlp fc2 W^T (bf16)
    ]

    return pl.pallas_call(
        block_kernel,
        out_shape=jax.ShapeDtypeStruct((B, T, E), jnp.float32),
        grid=grid,
        in_specs=in_specs,
        out_specs=pl.BlockSpec((Bb, T, E), lambda b: (b, 0, 0)),
        compiler_params=pltpu.CompilerParams(
            dimension_semantics=("parallel",),
            vmem_limit_bytes=48 * 1024 * 1024),
    )(x, small,
      wqkv_t, bqkv,
      wo_t,
      w1_t, params["b1"],
      w2_t)


def block_reference(x, params):
    """Pure-JAX f32 reference mirroring PyTorch semantics (eval mode)."""
    def ln(h, w, b):
        mu = jnp.mean(h, axis=-1, keepdims=True)
        var = jnp.mean((h - mu) ** 2, axis=-1, keepdims=True)
        return (h - mu) / jnp.sqrt(var + LN_EPS) * w[0] + b[0]

    def gelu(h):
        return 0.5 * h * (1.0 + lax.erf(h / math.sqrt(2.0)))

    h1 = ln(x, params["ln1_w"], params["ln1_b"])
    qkv = jnp.einsum("btd,ed->bte", h1, params["wqkv"]) + params["bqkv"][0]
    q, k, v = jnp.split(qkv, 3, axis=-1)
    B, T, E = x.shape

    def heads(a):
        return a.reshape(B, T, N_HEAD, HEAD_DIM).transpose(0, 2, 1, 3)

    qh, kh, vh = heads(q), heads(k), heads(v)
    s = jnp.einsum("bhqd,bhkd->bhqk", qh, kh) / math.sqrt(HEAD_DIM)
    p = jax.nn.softmax(s, axis=-1)
    o = jnp.einsum("bhqk,bhkd->bhqd", p, vh).transpose(0, 2, 1, 3).reshape(B, T, E)
    attn = jnp.einsum("btd,ed->bte", o, params["wo"]) + params["bo"][0]
    x1 = x + attn
    h2 = ln(x1, params["ln2_w"], params["ln2_b"])
    m = gelu(jnp.einsum("btd,hd->bth", h2, params["w1"]) + params["b1"][0])
    m = jnp.einsum("bth,dh->btd", m, params["w2"]) + params["b2"][0]
    return x1 + m


def make_params(key):
    ks = jax.random.split(key, 12)
    E, H = N_EMBD, HIDDEN
    n = lambda k, s, sc=0.02: (sc * jax.random.normal(k, s)).astype(jnp.float32)
    return {
        "ln1_w": jnp.ones((1, E), jnp.float32) + n(ks[0], (1, E), 0.1),
        "ln1_b": n(ks[1], (1, E), 0.1),
        "wqkv": n(ks[2], (3 * E, E)),
        "bqkv": n(ks[3], (1, 3 * E), 0.01),
        "wo":   n(ks[4], (E, E)),
        "bo":   n(ks[5], (1, E), 0.01),
        "ln2_w": jnp.ones((1, E), jnp.float32) + n(ks[6], (1, E), 0.1),
        "ln2_b": n(ks[7], (1, E), 0.1),
        "w1":   n(ks[8], (H, E)),
        "b1":   n(ks[9], (1, H), 0.01),
        "w2":   n(ks[10], (E, H)),
        "b2":   n(ks[11], (1, E), 0.01),
    }


if __name__ == "__main__":
    key = jax.random.PRNGKey(0)
    kx, kp = jax.random.split(key)
    B, T = 2, 8
    x = jax.random.normal(kx, (B, T, N_EMBD), dtype=jnp.float32)
    params = make_params(kp)

    out = block_forward(x, params)
    out = jax.block_until_ready(out)

    ref = block_reference(x, params)
    assert out.shape == (B, T, N_EMBD)
    # Tolerance loosened vs. the pure-f32 reference because the kernel runs its
    # matmuls with bf16 inputs (f32 accumulation) and an approx reciprocal.
    assert jnp.allclose(out, ref, atol=2e-2, rtol=2e-2), float(jnp.max(jnp.abs(out - ref)))

    print("KERNEL_OK")
</pallas_src>

<mosaic_0001>
module attributes {stable_mosaic.version = 11 : i64} {
  func.func @block_kernel(%arg0: i32, %arg1: memref<2x8x128xf32, #tpu.memory_space<vmem>>, %arg2: memref<6x128xf32, #tpu.memory_space<vmem>>, %arg3: memref<128x384xbf16, #tpu.memory_space<vmem>>, %arg4: memref<1x384xf32, #tpu.memory_space<vmem>>, %arg5: memref<128x128xbf16, #tpu.memory_space<vmem>>, %arg6: memref<128x512xbf16, #tpu.memory_space<vmem>>, %arg7: memref<1x512xf32, #tpu.memory_space<vmem>>, %arg8: memref<512x128xbf16, #tpu.memory_space<vmem>>, %arg9: memref<2x8x128xf32, #tpu.memory_space<vmem>>) attributes {dimension_semantics = [#tpu.dimension_semantics<parallel>], iteration_bounds = array<i64: 1>, scalar_prefetch = 0 : i64, scratch_operands = 0 : i64, tpu.core_type = #tpu.core_type<tc>, window_params = [{transform_indices = @transform_0, window_bounds = array<i64: 2, 8, 128>}, {pipeline_mode = #tpu.pipeline_mode<synchronous>, transform_indices = @transform_1, window_bounds = array<i64: 6, 128>}, {pipeline_mode = #tpu.pipeline_mode<synchronous>, transform_indices = @transform_2, window_bounds = array<i64: 128, 384>}, {pipeline_mode = #tpu.pipeline_mode<synchronous>, transform_indices = @transform_3, window_bounds = array<i64: 1, 384>}, {pipeline_mode = #tpu.pipeline_mode<synchronous>, transform_indices = @transform_4, window_bounds = array<i64: 128, 128>}, {pipeline_mode = #tpu.pipeline_mode<synchronous>, transform_indices = @transform_5, window_bounds = array<i64: 128, 512>}, {pipeline_mode = #tpu.pipeline_mode<synchronous>, transform_indices = @transform_6, window_bounds = array<i64: 1, 512>}, {pipeline_mode = #tpu.pipeline_mode<synchronous>, transform_indices = @transform_7, window_bounds = array<i64: 512, 128>}, {transform_indices = @transform_8, window_bounds = array<i64: 2, 8, 128>}]} {
    %c0 = arith.constant 0 : index
    %c0_0 = arith.constant 0 : index
    %c0_1 = arith.constant 0 : index
    %0 = vector.load %arg1[%c0, %c0_0, %c0_1] : memref<2x8x128xf32, #tpu.memory_space<vmem>>, vector<2x8x128xf32>
    %1 = vector.shape_cast %0 : vector<2x8x128xf32> to vector<16x128xf32>
    %c0_2 = arith.constant 0 : index
    %c0_3 = arith.constant 0 : index
    %2 = vector.load %arg2[%c0_2, %c0_3] : memref<6x128xf32, #tpu.memory_space<vmem>>, vector<1x128xf32>
    %c1 = arith.constant 1 : index
    %c0_4 = arith.constant 0 : index
    %3 = vector.load %arg2[%c1, %c0_4] : memref<6x128xf32, #tpu.memory_space<vmem>>, vector<1x128xf32>
    %c2 = arith.constant 2 : index
    %c0_5 = arith.constant 0 : index
    %4 = vector.load %arg2[%c2, %c0_5] : memref<6x128xf32, #tpu.memory_space<vmem>>, vector<1x128xf32>
    %c3 = arith.constant 3 : index
    %c0_6 = arith.constant 0 : index
    %5 = vector.load %arg2[%c3, %c0_6] : memref<6x128xf32, #tpu.memory_space<vmem>>, vector<1x128xf32>
    %c4 = arith.constant 4 : index
    %c0_7 = arith.constant 0 : index
    %6 = vector.load %arg2[%c4, %c0_7] : memref<6x128xf32, #tpu.memory_space<vmem>>, vector<1x128xf32>
    %c5 = arith.constant 5 : index
    %c0_8 = arith.constant 0 : index
    %7 = vector.load %arg2[%c5, %c0_8] : memref<6x128xf32, #tpu.memory_space<vmem>>, vector<1x128xf32>
    %cst = arith.constant dense<0.000000e+00> : vector<16xf32>
    %8 = vector.multi_reduction <add>, %1, %cst [1] : vector<16x128xf32> to vector<16xf32>
    %9 = vector.shape_cast %8 : vector<16xf32> to vector<16x1xf32>
    %cst_9 = arith.constant 1.280000e+02 : f32
    %10 = vector.broadcast %cst_9 : f32 to vector<16x1xf32>
    %11 = arith.divf %9, %10 : vector<16x1xf32>
    %12 = vector.broadcast %11 : vector<16x1xf32> to vector<16x128xf32>
    %13 = arith.subf %1, %12 : vector<16x128xf32>
    %14 = arith.mulf %13, %13 : vector<16x128xf32>
    %cst_10 = arith.constant dense<0.000000e+00> : vector<16xf32>
    %15 = vector.multi_reduction <add>, %14, %cst_10 [1] : vector<16x128xf32> to vector<16xf32>
    %16 = vector.shape_cast %15 : vector<16xf32> to vector<16x1xf32>
    %cst_11 = arith.constant 1.280000e+02 : f32
    %17 = vector.broadcast %cst_11 : f32 to vector<16x1xf32>
    %18 = arith.divf %16, %17 : vector<16x1xf32>
    %cst_12 = arith.constant 9.99999974E-6 : f32
    %19 = vector.broadcast %cst_12 : f32 to vector<16x1xf32>
    %20 = arith.addf %18, %19 : vector<16x1xf32>
    %21 = math.rsqrt %20 : vector<16x1xf32>
    %22 = vector.broadcast %21 : vector<16x1xf32> to vector<16x128xf32>
    %23 = arith.mulf %13, %22 : vector<16x128xf32>
    %24 = vector.broadcast %2 : vector<1x128xf32> to vector<16x128xf32>
    %25 = arith.mulf %23, %24 : vector<16x128xf32>
    %26 = vector.broadcast %3 : vector<1x128xf32> to vector<16x128xf32>
    %27 = arith.addf %25, %26 : vector<16x128xf32>
    %28 = arith.truncf %27 : vector<16x128xf32> to vector<16x128xbf16>
    %c0_13 = arith.constant 0 : index
    %c0_14 = arith.constant 0 : index
    %29 = vector.load %arg3[%c0_13, %c0_14] : memref<128x384xbf16, #tpu.memory_space<vmem>>, vector<128x384xbf16>
    %cst_15 = arith.constant dense<0.000000e+00> : vector<16x384xf32>
    %30 = tpu.matmul %28, %29, %cst_15 {dimension_numbers = #tpu.dot_dimension_numbers<[1], [0], [0], [1], [0, 0, 1, 1], [], []>} : vector<16x128xbf16>, vector<128x384xbf16>, vector<16x384xf32> -> vector<16x384xf32>
    %c0_16 = arith.constant 0 : index
    %c0_17 = arith.constant 0 : index
    %31 = vector.load %arg4[%c0_16, %c0_17] : memref<1x384xf32, #tpu.memory_space<vmem>>, vector<1x384xf32>
    %32 = vector.broadcast %31 : vector<1x384xf32> to vector<16x384xf32>
    %33 = arith.addf %30, %32 : vector<16x384xf32>
    %cst_18 = arith.constant 0.000000e+00 : f32
    %34 = vector.broadcast %cst_18 : f32 to vector<16x128xf32>
    %35 = vector.extract_strided_slice %33 {offsets = [0, 0], sizes = [16, 64], strides = [1, 1]} : vector<16x384xf32> to vector<16x64xf32>
    %36 = vector.shape_cast %35 : vector<16x64xf32> to vector<2x8x64xf32>
    %37 = vector.extract_strided_slice %33 {offsets = [0, 128], sizes = [16, 64], strides = [1, 1]} : vector<16x384xf32> to vector<16x64xf32>
    %38 = vector.shape_cast %37 : vector<16x64xf32> to vector<2x8x64xf32>
    %39 = vector.extract_strided_slice %33 {offsets = [0, 256], sizes = [16, 64], strides = [1, 1]} : vector<16x384xf32> to vector<16x64xf32>
    %40 = vector.shape_cast %39 : vector<16x64xf32> to vector<2x8x64xf32>
    %41 = arith.truncf %36 : vector<2x8x64xf32> to vector<2x8x64xbf16>
    %42 = arith.truncf %38 : vector<2x8x64xf32> to vector<2x8x64xbf16>
    "tpu.trace_start"() <{level = 10 : i32, message = "bqd,bkd->bqk"}> : () -> ()
    %cst_19 = arith.constant dense<0.000000e+00> : vector<2x8x8xf32>
    %43 = tpu.matmul %41, %42, %cst_19 {dimension_numbers = #tpu.dot_dimension_numbers<[2], [2], [1], [1], [0, 0, 0, 1, 1, 1], [0], [0]>} : vector<2x8x64xbf16>, vector<2x8x64xbf16>, vector<2x8x8xf32> -> vector<2x8x8xf32>
    "tpu.trace_stop"() : () -> ()
    %cst_20 = arith.constant dense<0xFF800000> : vector<2x8xf32>
    %44 = vector.multi_reduction <maximumf>, %43, %cst_20 [2] : vector<2x8x8xf32> to vector<2x8xf32>
    %45 = vector.shape_cast %44 : vector<2x8xf32> to vector<2x8x1xf32>
    %46 = vector.broadcast %45 : vector<2x8x1xf32> to vector<2x8x8xf32>
    %47 = arith.subf %43, %46 : vector<2x8x8xf32>
    %48 = math.exp %47 : vector<2x8x8xf32>
    %cst_21 = arith.constant dense<0.000000e+00> : vector<2x8xf32>
    %49 = vector.multi_reduction <add>, %48, %cst_21 [2] : vector<2x8x8xf32> to vector<2x8xf32>
    %50 = vector.shape_cast %49 : vector<2x8xf32> to vector<2x8x1xf32>
    %51 = tpu.reciprocal %50 {approx = true} : vector<2x8x1xf32> -> vector<2x8x1xf32>
    %52 = vector.broadcast %51 : vector<2x8x1xf32> to vector<2x8x8xf32>
    %53 = arith.mulf %48, %52 : vector<2x8x8xf32>
    %54 = arith.truncf %53 : vector<2x8x8xf32> to vector<2x8x8xbf16>
    %55 = arith.truncf %40 : vector<2x8x64xf32> to vector<2x8x64xbf16>
    "tpu.trace_start"() <{level = 10 : i32, message = "bqk,bkd->bqd"}> : () -> ()
    %cst_22 = arith.constant dense<0.000000e+00> : vector<2x8x64xf32>
    %56 = tpu.matmul %54, %55, %cst_22 {dimension_numbers = #tpu.dot_dimension_numbers<[2], [1], [1], [2], [0, 0, 0, 1, 1, 2], [0], [0]>} : vector<2x8x8xbf16>, vector<2x8x64xbf16>, vector<2x8x64xf32> -> vector<2x8x64xf32>
    "tpu.trace_stop"() : () -> ()
    %57 = vector.shape_cast %56 : vector<2x8x64xf32> to vector<16x64xf32>
    %58 = arith.truncf %57 : vector<16x64xf32> to vector<16x64xbf16>
    %c0_23 = arith.constant 0 : index
    %c0_24 = arith.constant 0 : index
    %59 = vector.load %arg5[%c0_23, %c0_24] : memref<128x128xbf16, #tpu.memory_space<vmem>>, vector<64x128xbf16>
    %cst_25 = arith.constant dense<0.000000e+00> : vector<16x128xf32>
    %60 = tpu.matmul %58, %59, %cst_25 {dimension_numbers = #tpu.dot_dimension_numbers<[1], [0], [0], [1], [0, 0, 1, 1], [], []>} : vector<16x64xbf16>, vector<64x128xbf16>, vector<16x128xf32> -> vector<16x128xf32>
    %61 = arith.addf %34, %60 : vector<16x128xf32>
    %62 = vector.extract_strided_slice %33 {offsets = [0, 64], sizes = [16, 64], strides = [1, 1]} : vector<16x384xf32> to vector<16x64xf32>
    %63 = vector.shape_cast %62 : vector<16x64xf32> to vector<2x8x64xf32>
    %64 = vector.extract_strided_slice %33 {offsets = [0, 192], sizes = [16, 64], strides = [1, 1]} : vector<16x384xf32> to vector<16x64xf32>
    %65 = vector.shape_cast %64 : vector<16x64xf32> to vector<2x8x64xf32>
    %66 = vector.extract_strided_slice %33 {offsets = [0, 320], sizes = [16, 64], strides = [1, 1]} : vector<16x384xf32> to vector<16x64xf32>
    %67 = vector.shape_cast %66 : vector<16x64xf32> to vector<2x8x64xf32>
    %68 = arith.truncf %63 : vector<2x8x64xf32> to vector<2x8x64xbf16>
    %69 = arith.truncf %65 : vector<2x8x64xf32> to vector<2x8x64xbf16>
    "tpu.trace_start"() <{level = 10 : i32, message = "bqd,bkd->bqk"}> : () -> ()
    %cst_26 = arith.constant dense<0.000000e+00> : vector<2x8x8xf32>
    %70 = tpu.matmul %68, %69, %cst_26 {dimension_numbers = #tpu.dot_dimension_numbers<[2], [2], [1], [1], [0, 0, 0, 1, 1, 1], [0], [0]>} : vector<2x8x64xbf16>, vector<2x8x64xbf16>, vector<2x8x8xf32> -> vector<2x8x8xf32>
    "tpu.trace_stop"() : () -> ()
    %cst_27 = arith.constant dense<0xFF800000> : vector<2x8xf32>
    %71 = vector.multi_reduction <maximumf>, %70, %cst_27 [2] : vector<2x8x8xf32> to vector<2x8xf32>
    %72 = vector.shape_cast %71 : vector<2x8xf32> to vector<2x8x1xf32>
    %73 = vector.broadcast %72 : vector<2x8x1xf32> to vector<2x8x8xf32>
    %74 = arith.subf %70, %73 : vector<2x8x8xf32>
    %75 = math.exp %74 : vector<2x8x8xf32>
    %cst_28 = arith.constant dense<0.000000e+00> : vector<2x8xf32>
    %76 = vector.multi_reduction <add>, %75, %cst_28 [2] : vector<2x8x8xf32> to vector<2x8xf32>
    %77 = vector.shape_cast %76 : vector<2x8xf32> to vector<2x8x1xf32>
    %78 = tpu.reciprocal %77 {approx = true} : vector<2x8x1xf32> -> vector<2x8x1xf32>
    %79 = vector.broadcast %78 : vector<2x8x1xf32> to vector<2x8x8xf32>
    %80 = arith.mulf %75, %79 : vector<2x8x8xf32>
    %81 = arith.truncf %80 : vector<2x8x8xf32> to vector<2x8x8xbf16>
    %82 = arith.truncf %67 : vector<2x8x64xf32> to vector<2x8x64xbf16>
    "tpu.trace_start"() <{level = 10 : i32, message = "bqk,bkd->bqd"}> : () -> ()
    %cst_29 = arith.constant dense<0.000000e+00> : vector<2x8x64xf32>
    %83 = tpu.matmul %81, %82, %cst_29 {dimension_numbers = #tpu.dot_dimension_numbers<[2], [1], [1], [2], [0, 0, 0, 1, 1, 2], [0], [0]>} : vector<2x8x8xbf16>, vector<2x8x64xbf16>, vector<2x8x64xf32> -> vector<2x8x64xf32>
    "tpu.trace_stop"() : () -> ()
    %84 = vector.shape_cast %83 : vector<2x8x64xf32> to vector<16x64xf32>
    %85 = arith.truncf %84 : vector<16x64xf32> to vector<16x64xbf16>
    %c64 = arith.constant 64 : index
    %c0_30 = arith.constant 0 : index
    %86 = vector.load %arg5[%c64, %c0_30] : memref<128x128xbf16, #tpu.memory_space<vmem>>, vector<64x128xbf16>
    %cst_31 = arith.constant dense<0.000000e+00> : vector<16x128xf32>
    %87 = tpu.matmul %85, %86, %cst_31 {dimension_numbers = #tpu.dot_dimension_numbers<[1], [0], [0], [1], [0, 0, 1, 1], [], []>} : vector<16x64xbf16>, vector<64x128xbf16>, vector<16x128xf32> -> vector<16x128xf32>
    %88 = arith.addf %61, %87 : vector<16x128xf32>
    %89 = vector.broadcast %6 : vector<1x128xf32> to vector<16x128xf32>
    %90 = arith.addf %88, %89 : vector<16x128xf32>
    %91 = arith.addf %1, %90 : vector<16x128xf32>
    %cst_32 = arith.constant dense<0.000000e+00> : vector<16xf32>
    %92 = vector.multi_reduction <add>, %91, %cst_32 [1] : vector<16x128xf32> to vector<16xf32>
    %93 = vector.shape_cast %92 : vector<16xf32> to vector<16x1xf32>
    %cst_33 = arith.constant 1.280000e+02 : f32
    %94 = vector.broadcast %cst_33 : f32 to vector<16x1xf32>
    %95 = arith.divf %93, %94 : vector<16x1xf32>
    %96 = vector.broadcast %95 : vector<16x1xf32> to vector<16x128xf32>
    %97 = arith.subf %91, %96 : vector<16x128xf32>
    %98 = arith.mulf %97, %97 : vector<16x128xf32>
    %cst_34 = arith.constant dense<0.000000e+00> : vector<16xf32>
    %99 = vector.multi_reduction <add>, %98, %cst_34 [1] : vector<16x128xf32> to vector<16xf32>
    %100 = vector.shape_cast %99 : vector<16xf32> to vector<16x1xf32>
    %cst_35 = arith.constant 1.280000e+02 : f32
    %101 = vector.broadcast %cst_35 : f32 to vector<16x1xf32>
    %102 = arith.divf %100, %101 : vector<16x1xf32>
    %cst_36 = arith.constant 9.99999974E-6 : f32
    %103 = vector.broadcast %cst_36 : f32 to vector<16x1xf32>
    %104 = arith.addf %102, %103 : vector<16x1xf32>
    %105 = math.rsqrt %104 : vector<16x1xf32>
    %106 = vector.broadcast %105 : vector<16x1xf32> to vector<16x128xf32>
    %107 = arith.mulf %97, %106 : vector<16x128xf32>
    %108 = vector.broadcast %4 : vector<1x128xf32> to vector<16x128xf32>
    %109 = arith.mulf %107, %108 : vector<16x128xf32>
    %110 = vector.broadcast %5 : vector<1x128xf32> to vector<16x128xf32>
    %111 = arith.addf %109, %110 : vector<16x128xf32>
    %112 = arith.truncf %111 : vector<16x128xf32> to vector<16x128xbf16>
    %c0_37 = arith.constant 0 : index
    %c0_38 = arith.constant 0 : index
    %113 = vector.load %arg6[%c0_37, %c0_38] : memref<128x512xbf16, #tpu.memory_space<vmem>>, vector<128x512xbf16>
    %cst_39 = arith.constant dense<0.000000e+00> : vector<16x512xf32>
    %114 = tpu.matmul %112, %113, %cst_39 {dimension_numbers = #tpu.dot_dimension_numbers<[1], [0], [0], [1], [0, 0, 1, 1], [], []>} : vector<16x128xbf16>, vector<128x512xbf16>, vector<16x512xf32> -> vector<16x512xf32>
    %c0_40 = arith.constant 0 : index
    %c0_41 = arith.constant 0 : index
    %115 = vector.load %arg7[%c0_40, %c0_41] : memref<1x512xf32, #tpu.memory_space<vmem>>, vector<1x512xf32>
    %116 = vector.broadcast %115 : vector<1x512xf32> to vector<16x512xf32>
    %117 = arith.addf %114, %116 : vector<16x512xf32>
    %cst_42 = arith.constant 5.000000e-01 : f32
    %118 = vector.broadcast %cst_42 : f32 to vector<16x512xf32>
    %119 = arith.mulf %118, %117 : vector<16x512xf32>
    %cst_43 = arith.constant 0.707106769 : f32
    %120 = vector.broadcast %cst_43 : f32 to vector<16x512xf32>
    %121 = arith.mulf %117, %120 : vector<16x512xf32>
    %122 = math.erf %121 : vector<16x512xf32>
    %cst_44 = arith.constant 1.000000e+00 : f32
    %123 = vector.broadcast %cst_44 : f32 to vector<16x512xf32>
    %124 = arith.addf %123, %122 : vector<16x512xf32>
    %125 = arith.mulf %119, %124 : vector<16x512xf32>
    %126 = arith.truncf %125 : vector<16x512xf32> to vector<16x512xbf16>
    %c0_45 = arith.constant 0 : index
    %c0_46 = arith.constant 0 : index
    %127 = vector.load %arg8[%c0_45, %c0_46] : memref<512x128xbf16, #tpu.memory_space<vmem>>, vector<512x128xbf16>
    %cst_47 = arith.constant dense<0.000000e+00> : vector<16x128xf32>
    %128 = tpu.matmul %126, %127, %cst_47 {dimension_numbers = #tpu.dot_dimension_numbers<[1], [0], [0], [1], [0, 0, 1, 1], [], []>} : vector<16x512xbf16>, vector<512x128xbf16>, vector<16x128xf32> -> vector<16x128xf32>
    %129 = vector.broadcast %7 : vector<1x128xf32> to vector<16x128xf32>
    %130 = arith.addf %128, %129 : vector<16x128xf32>
    %131 = arith.addf %91, %130 : vector<16x128xf32>
    %132 = vector.shape_cast %131 : vector<16x128xf32> to vector<2x8x128xf32>
    %c0_48 = arith.constant 0 : index
    %c0_49 = arith.constant 0 : index
    %c0_50 = arith.constant 0 : index
    %133 = vector.load %arg9[%c0_48, %c0_49, %c0_50] : memref<2x8x128xf32, #tpu.memory_space<vmem>>, vector<2x8x128xf32>
    tpu.vector_store %arg9[%c0_48, %c0_49, %c0_50], %132 {strides = array<i32>} : memref<2x8x128xf32, #tpu.memory_space<vmem>>, vector<2x8x128xf32>,
    return
  }
  func.func @transform_0(%arg0: i32) -> (i32, i32, i32) {
    %c0_i32 = arith.constant 0 : i32
    %c0_i32_0 = arith.constant 0 : i32
    %c0_i32_1 = arith.constant 0 : i32
    return %arg0, %c0_i32, %c0_i32_0 : i32, i32, i32
  }
  func.func @transform_1(%arg0: i32) -> (i32, i32) {
    %c0_i32 = arith.constant 0 : i32
    %c0_i32_0 = arith.constant 0 : i32
    %c0_i32_1 = arith.constant 0 : i32
    return %c0_i32, %c0_i32_0 : i32, i32
  }
  func.func @transform_2(%arg0: i32) -> (i32, i32) {
    %c0_i32 = arith.constant 0 : i32
    %c0_i32_0 = arith.constant 0 : i32
    %c0_i32_1 = arith.constant 0 : i32
    return %c0_i32, %c0_i32_0 : i32, i32
  }
  func.func @transform_3(%arg0: i32) -> (i32, i32) {
    %c0_i32 = arith.constant 0 : i32
    %c0_i32_0 = arith.constant 0 : i32
    %c0_i32_1 = arith.constant 0 : i32
    return %c0_i32, %c0_i32_0 : i32, i32
  }
  func.func @transform_4(%arg0: i32) -> (i32, i32) {
    %c0_i32 = arith.constant 0 : i32
    %c0_i32_0 = arith.constant 0 : i32
    %c0_i32_1 = arith.constant 0 : i32
    return %c0_i32, %c0_i32_0 : i32, i32
  }
  func.func @transform_5(%arg0: i32) -> (i32, i32) {
    %c0_i32 = arith.constant 0 : i32
    %c0_i32_0 = arith.constant 0 : i32
    %c0_i32_1 = arith.constant 0 : i32
    return %c0_i32, %c0_i32_0 : i32, i32
  }
  func.func @transform_6(%arg0: i32) -> (i32, i32) {
    %c0_i32 = arith.constant 0 : i32
    %c0_i32_0 = arith.constant 0 : i32
    %c0_i32_1 = arith.constant 0 : i32
    return %c0_i32, %c0_i32_0 : i32, i32
  }
  func.func @transform_7(%arg0: i32) -> (i32, i32) {
    %c0_i32 = arith.constant 0 : i32
    %c0_i32_0 = arith.constant 0 : i32
    %c0_i32_1 = arith.constant 0 : i32
    return %c0_i32, %c0_i32_0 : i32, i32
  }
  func.func @transform_8(%arg0: i32) -> (i32, i32, i32) {
    %c0_i32 = arith.constant 0 : i32
    %c0_i32_0 = arith.constant 0 : i32
    %c0_i32_1 = arith.constant 0 : i32
    return %arg0, %c0_i32, %c0_i32_0 : i32, i32, i32
  }
}

</mosaic_0001>

<bundles_post_ra>
// kernel: tpu_custom_call.1
= control target key start
LH: loop header
LB: loop body
LE: loop exit
PB: predicated region body
PF: predicated region fallthrough
CT: control target
= control target key end

     0   :  { %13 = vsyncpa [#allocation3], 0  ;;  %s2635_s0 = inlined_call_operand.hbm [shape: f32[2,8,128], index: 0, kind: input, shape index: {}]   ;;  %s2636_s1 = inlined_call_operand.hbm [shape: f32[6,128], index: 1, kind: input, shape index: {}]   ;;  %s2637_s2 = inlined_call_operand.hbm [shape: bf16[128,384], index: 2, kind: input, shape index: {}]   ;;  %s2638_s3 = inlined_call_operand.vmem [shape: f32[1,384], index: 3, kind: input, shape index: {}]   ;;  %s2639_s4 = inlined_call_operand.hbm [shape: bf16[128,128], index: 4, kind: input, shape index: {}]   ;;  %s2640_s5 = inlined_call_operand.hbm [shape: bf16[128,512], index: 5, kind: input, shape index: {}]   ;;  %s2641_s6 = inlined_call_operand.vmem [shape: f32[1,512], index: 6, kind: input, shape index: {}]   ;;  %s2642_s7 = inlined_call_operand.hbm [shape: bf16[512,128], index: 7, kind: input, shape index: {}]   ;;  %s2643_s8 = inlined_call_operand.hbm [shape: f32[2,8,128], index: 8, kind: output, shape index: {}]  }
   0x1   :  { %14 = vsyncpa [#allocation6], 0 }
   0x2   :  { %15 = vsyncpa [#allocation9], 0 }
   0x3   :  { %16 = vsyncpa [#allocation12], 0 }
   0x4   :  { %17 = vsyncpa [#allocation4], 0  ;;  %s2377_s27 = smov [#allocation5]   ;;  %s2378_s29 = smov [#allocation8]  }
   0x5   :  { %s36_s28 = sshll.u32 %s2377_s27, 4  ;;  %s59_s30 = sshll.u32 %s2378_s29, 4  ;;  %s37_s28 = int_to_ptr.vmem [resolvable:$true] %s36_s28  ;;  %s60_s30 = int_to_ptr.vmem [resolvable:$true] %s59_s30 }
   0x6   :  { %s2235_s9 = scalar_lea.vmem %s37_s28, 128  ;;  %p2240_p1 = scmp.lt.s32.totalorder %s37_s28, %s37_s28 }
   0x7   :  { %p2236_p0 = scmp.ne.s32.totalorder %s37_s28, %s2235_s9  ;;  %p2241_p2 = scmp.lt.s32.totalorder %s2235_s9, %s2235_s9 }
   0x9   :  { %p2242_p3 = por %p2241_p2, %p2240_p1 }
   0xb   :  { %p2243_p4 = pnand %p2242_p3, %p2236_p0 }
   0xd   :  { %2246 = shalt.err (!%p2243_p4)
}
   0xe   :  { %39 = dma.hbm_to_vmem [thread:$0]  %s2636_s1, 128, %s37_s28, [#allocation6]  }
   0xf   :  { %s2255_s12 = scalar_lea.vmem %s60_s30, 1024  ;;  %p2260_p6 = scmp.lt.s32.totalorder %s60_s30, %s60_s30 }
  0x10   :  { %p2256_p5 = scmp.ne.s32.totalorder %s60_s30, %s2255_s12  ;;  %p2261_p7 = scmp.lt.s32.totalorder %s2255_s12, %s2255_s12 }
  0x12   :  { %p2262_p8 = por %p2261_p7, %p2260_p6 }
  0x14   :  { %p2263_p9 = pnand %p2262_p8, %p2256_p5 }
  0x16   :  { %2266 = shalt.err (!%p2263_p9)
}
  0x17   :  { %s2379_s13 = smov 64   ;;  %s2380_s14 = smov 4  }
  0x18   :  { %65 = dma.hbm_to_vmem [thread:$0]  %s2639_s4, 1024, %s60_s30, [#allocation9], %s2379_s13, %s2379_s13, %s2380_s14  }
  0x19   :  { %s2381_s17 = smov [#allocation2]  }
  0x1a   :  { %s23_s18 = sshll.u32 %s2381_s17, 4  ;;  %s24_s18 = int_to_ptr.vmem [resolvable:$true] %s23_s18 }
  0x1b   :  { %s2275_s1 = scalar_lea.vmem %s24_s18, 256  ;;  %p2280_p11 = scmp.lt.s32.totalorder %s24_s18, %s24_s18 }
  0x1c   :  { %p2276_p10 = scmp.ne.s32.totalorder %s24_s18, %s2275_s1  ;;  %p2281_p12 = scmp.lt.s32.totalorder %s2275_s1, %s2275_s1 }
  0x1e   :  { %p2282_p13 = por %p2281_p12, %p2280_p11 }
  0x20   :  { %p2283_p0 = pnand %p2282_p13, %p2276_p10 }
  0x22   :  { %2286 = shalt.err (!%p2283_p0)
}
  0x23   :  { %s2382_s19 = smov 128   ;;  %s2383_s20 = smov 8  }
  0x24   :  { %29 = dma.hbm_to_vmem [thread:$0]  %s2635_s0, 256, %s24_s18, [#allocation3], %s2382_s19, %s2382_s19, %s2383_s20  }
  0x25   :  { %s2384_s4 = smov [#allocation7]  }
  0x26   :  { %s45_s23 = sshll.u32 %s2384_s4, 4  ;;  %s46_s23 = int_to_ptr.vmem [resolvable:$true] %s45_s23 }
  0x27   :  { %s2295_s24 = scalar_lea.vmem %s46_s23, 3072  ;;  %p2300_p2 = scmp.lt.s32.totalorder %s46_s23, %s46_s23 }
  0x28   :  { %p2296_p1 = scmp.ne.s32.totalorder %s46_s23, %s2295_s24  ;;  %p2301_p3 = scmp.lt.s32.totalorder %s2295_s24, %s2295_s24 }
  0x2a   :  { %p2302_p4 = por %p2301_p3, %p2300_p2 }
  0x2c   :  { %p2303_p5 = pnand %p2302_p4, %p2296_p1 }
  0x2e   :  { %2306 = shalt.err (!%p2303_p5)
}
  0x2f   :  { %s2385_s25 = smov 192   ;;  %s2386_s26 = smov 12  }
  0x30   :  { %51 = dma.hbm_to_vmem [thread:$0]  %s2637_s2, 3072, %s46_s23, [#allocation6], %s2385_s25, %s2385_s25, %s2386_s26  }
  0x31   :  { %s2387_s29 = smov [#allocation10]  }
  0x32   :  { %s71_s30 = sshll.u32 %s2387_s29, 4  ;;  %s72_s30 = int_to_ptr.vmem [resolvable:$true] %s71_s30 }
  0x33   :  { %s2315_s0 = scalar_lea.vmem %s72_s30, 4096  ;;  %p2320_p7 = scmp.lt.s32.totalorder %s72_s30, %s72_s30 }
  0x34   :  { %p2316_p6 = scmp.ne.s32.totalorder %s72_s30, %s2315_s0  ;;  %p2321_p8 = scmp.lt.s32.totalorder %s2315_s0, %s2315_s0 }
  0x36   :  { %p2322_p9 = por %p2321_p8, %p2320_p7 }
  0x38   :  { %p2323_p10 = pnand %p2322_p9, %p2316_p6 }
  0x3a   :  { %2326 = shalt.err (!%p2323_p10)
}
  0x3b   :  { %s2388_s9 = smov 256   ;;  %s2389_s10 = smov 16  }
  0x3c   :  { %77 = dma.hbm_to_vmem [thread:$0]  %s2640_s5, 4096, %s72_s30, [#allocation9], %s2388_s9, %s2388_s9, %s2389_s10  }
  0x3d   :  { %s2390_s15 = smov [#allocation11]  }
  0x3e   :  { %s85_s16 = sshll.u32 %s2390_s15, 4  ;;  %s86_s16 = int_to_ptr.vmem [resolvable:$true] %s85_s16 }
  0x3f   :  { %s2335_s2 = scalar_lea.vmem %s86_s16, 4096  ;;  %p2340_p12 = scmp.lt.s32.totalorder %s86_s16, %s86_s16 }
  0x40   :  { %p2336_p11 = scmp.ne.s32.totalorder %s86_s16, %s2335_s2  ;;  %p2341_p13 = scmp.lt.s32.totalorder %s2335_s2, %s2335_s2 }
  0x42   :  { %p2342_p0 = por %p2341_p13, %p2340_p12 }
  0x44   :  { %p2343_p1 = pnand %p2342_p0, %p2336_p11 }
  0x46   :  { %2346 = shalt.err (!%p2343_p1)
}
  0x47   :  { %91 = dma.hbm_to_vmem [thread:$0]  %s2642_s7, 4096, %s86_s16, [#allocation12], %s2379_s13, %s2379_s13, %s2380_s14  }
  0x48   :  { %2367 = dma.done.wait [#allocation3], 256  }
  0x49   :  { %2368 = vsyncadd [#allocation3], 4294967040 }
  0x4a   :  { %2369 = dma.done.wait [#allocation6], 3200  }
  0x4b   :  { %2370 = vsyncadd [#allocation6], 4294964096 }
  0x4c   :  { %2371 = dma.done.wait [#allocation9], 5120  }
  0x4d   :  { %2372 = vsyncadd [#allocation9], 4294962176 }
  0x4e   :  { %2373 = dma.done.wait [#allocation12], 4096  }
  0x4f   :  { %2374 = vsyncadd [#allocation12], 4294963200  ;;  %v2467_v0 = vld [vmem:[#allocation2] sm:$0xff]  ;;  %v2469_v1 = vld [vmem:[#allocation2 + $0x8] sm:$0xff]  ;;  %v2391_v4 = vmov 0.0   ;;  %v2392_v27 = vmov 0   ;;  %v189_v53 = vlaneseq }
  0x50   :  { %119 = vadd.xlane.f32.xlu0 %v2467_v0  ;;  %v2067_v2 = vld [vmem:[#allocation7 + $0xac] ss:$12 sps:$4 sm:$0xff]   ;;  %v2069_v3 = vld [vmem:[#allocation7 + $0xa8] ss:$12 sps:$4 sm:$0xff]   ;;  %1957 = vmatprep.subr.bf16.mxu1 %v2391_v4  ;;  %v2070_v5 = vld [vmem:[#allocation7 + $0xb0] ss:$12 sps:$4 sm:$0xff]  }
  0x51   :  { %332 = vmatprep.subr.bf16.mxu0 %v2067_v2  ;;  %1958 = vmatpush3.bf16.msra.mxu1 %v2070_v5  ;;  %v2071_v14 = vld [vmem:[#allocation7 + $0x94] ss:$12 sps:$4 sm:$0xff]   ;;  %v2073_v15 = vld [vmem:[#allocation7 + $0x90] ss:$12 sps:$4 sm:$0xff]   ;;  %v2074_v16 = vld [vmem:[#allocation7 + $0x98] ss:$12 sps:$4 sm:$0xff]  }
  0x52   :  { %333 = vmatpush1.bf16.msra.mxu0 %v2069_v3  ;;  %1959 = vmatprep.subr.bf16.mxu1 %v2391_v4  ;;  %v2075_v17 = vld [vmem:[#allocation7 + $0x7c] ss:$12 sps:$4 sm:$0xff]   ;;  %v2077_v18 = vld [vmem:[#allocation7 + $0x78] ss:$12 sps:$4 sm:$0xff]   ;;  %v2078_v19 = vld [vmem:[#allocation7 + $0x80] ss:$12 sps:$4 sm:$0xff]  }
  0x53   :  { %334 = vmatprep.subr.bf16.mxu0 %v2071_v14  ;;  %v2079_v20 = vld [vmem:[#allocation7 + $0x64] ss:$12 sps:$4 sm:$0xff]   ;;  %v2081_v21 = vld [vmem:[#allocation7 + $0x60] ss:$12 sps:$4 sm:$0xff]   ;;  %v2082_v22 = vld [vmem:[#allocation7 + $0x68] ss:$12 sps:$4 sm:$0xff]   ;;  %364 = vmatprep.mubr.bf16.mxu0 %v2392_v27 }
  0x54   :  { %121 = vadd.xlane.f32.xlu0 %v2469_v1  ;;  %v2083_v23 = vld [vmem:[#allocation7 + $0x4c] ss:$12 sps:$4 sm:$0xff]   ;;  %v2085_v24 = vld [vmem:[#allocation7 + $0x48] ss:$12 sps:$4 sm:$0xff]   ;;  %v2086_v25 = vld [vmem:[#allocation7 + $0x50] ss:$12 sps:$4 sm:$0xff]  }
  0x55   :  { %1960 = vmatpush3.bf16.msra.mxu1 %v2074_v16  ;;  %v2087_v26 = vld [vmem:[#allocation7 + $0x34] ss:$12 sps:$4 sm:$0xff]   ;;  %vm2393_vm0 = vmmov 0   ;;  %v2089_v28 = vld [vmem:[#allocation7 + $0x30] ss:$12 sps:$4 sm:$0xff]   ;;  %v2502_v54 = vshrl.u32 %v189_v53, 7 }
  0x56   :  { %335 = vmatpush1.bf16.msra.mxu0 %v2073_v15  ;;  %1961 = vmatprep.subr.bf16.mxu1 %v2391_v4  ;;  %v2090_v29 = vld [vmem:[#allocation7 + $0x38] ss:$12 sps:$4 sm:$0xff]   ;;  %v2091_v30 = vld [vmem:[#allocation7 + $0x1c] ss:$12 sps:$4 sm:$0xff]   ;;  %v2094_v32 = vld [vmem:[#allocation7 + $0x20] ss:$12 sps:$4 sm:$0xff]  }
  0x57   :  { %336 = vmatprep.subr.bf16.mxu0 %v2075_v17  ;;  %1973 = vmatprep.mubr.msk.bf16.mxu1 %vm2393_vm0, %v2391_v4  ;;  %v2093_v31 = vld [vmem:[#allocation7 + $0x18] ss:$12 sps:$4 sm:$0xff]   ;;  %v2097_v34 = vld [vmem:[#allocation7] ss:$12 sps:$4 sm:$0xff]   ;;  %v2098_v35 = vld [vmem:[#allocation7 + $0x8] ss:$12 sps:$4 sm:$0xff]  }
  0x58   :  { %v2095_v33 = vld [vmem:[#allocation7 + $0x4] ss:$12 sps:$4 sm:$0xff]   ;;  %v1766_v44 = vld [vmem:[#allocation5] ss:$0 sm:$0xff]  ;;  %v1767_v48 = vld [vmem:[#allocation5 + $0x1] ss:$0 sm:$0xff] }
  0x59   :  { %1962 = vmatpush3.bf16.msra.mxu1 %v2078_v19  ;;  %v195_v55 = vsub.s32 1, %v2502_v54  ;;  %v187_v56 = vld [vmem:[%s2638_s3] sm:$0x7]  ;;  %v199_v57 = vsub.s32 2, %v2502_v54  ;;  %v191_v61 = vsub.s32 0, %v2502_v54  ;;  %vm420_vm1 = vcmask 523264  }
  0x5a   :  { %337 = vmatpush1.bf16.msra.mxu0 %v2077_v18  ;;  %1963 = vmatprep.subr.bf16.mxu1 %v2391_v4  ;;  %vm543_vm2 = vcmask 1043456   ;;  %vm513_vm3 = vcmask 64512  }
  0x5b   :  { %338 = vmatprep.subr.bf16.mxu0 %v2079_v20  ;;  %v196_v58 = vrot.slane %v187_v56, %v195_v55  ;;  %v200_v2 = vrot.slane %v187_v56, %v199_v57 }
  0x5d   :  { %1964 = vmatpush3.bf16.msra.mxu1 %v2082_v22 }
  0x5e   :  { %339 = vmatpush1.bf16.msra.mxu0 %v2081_v21  ;;  %1965 = vmatprep.subr.bf16.mxu1 %v2391_v4 }
  0x5f   :  { %340 = vmatprep.subr.bf16.mxu0 %v2083_v23 }
  0x61   :  { %1966 = vmatpush3.bf16.msra.mxu1 %v2086_v25 }
  0x62   :  { %341 = vmatpush1.bf16.msra.mxu0 %v2085_v24  ;;  %1967 = vmatprep.subr.bf16.mxu1 %v2391_v4 }
  0x63   :  { %342 = vmatprep.subr.bf16.mxu0 %v2087_v26 }
  0x65   :  { %1968 = vmatpush3.bf16.msra.mxu1 %v2090_v29 }
  0x66   :  { %343 = vmatpush1.bf16.msra.mxu0 %v2089_v28  ;;  %1969 = vmatprep.subr.bf16.mxu1 %v2391_v4 }
  0x67   :  { %344 = vmatprep.subr.bf16.mxu0 %v2091_v30 }
  0x69   :  { %1970 = vmatpush3.bf16.msra.mxu1 %v2094_v32 }
  0x6a   :  { %345 = vmatpush1.bf16.msra.mxu0 %v2093_v31  ;;  %1971 = vmatprep.subr.bf16.mxu1 %v2391_v4 }
  0x6b   :  { %346 = vmatprep.subr.bf16.mxu0 %v2095_v33 }
  0x6d   :  { %1972 = vmatpush3.bf16.msra.mxu1 %v2098_v35 }
  0x6e   :  { %347 = vmatpush1.bf16.msra.mxu0 %v2097_v34  ;;  %1983 = vmatprep.subr.bf16.mxu1 %v2391_v4 }
  0x6f   :  { %1977 = vmatprep.subr.bf16.mxu0 %v2391_v4 }
  0xd9   :  { %v120_v6 = vpop.xlane.xlu0 %119 }
  0xda   :  { %v124_v7 = vmul.f32 0.0078125, %v120_v6 }
  0xdc   :  { %v2476_v8 = vsub.f32 %v2467_v0, %v124_v7  ;;  %v192_v7 = vrot.slane %v187_v56, %v191_v61 }
  0xdd   :  { %v122_v9 = vpop.xlane.xlu0 %121 }
  0xde   :  { %v125_v10 = vmul.f32 0.0078125, %v122_v9  ;;  %v128_v11 = vmul.f32 %v2476_v8, %v2476_v8 }
  0xe0   :  { %v2481_v12 = vsub.f32 %v2469_v1, %v125_v10  ;;  %130 = vadd.xlane.f32.xlu1 %v128_v11 }
  0xe2   :  { %v129_v13 = vmul.f32 %v2481_v12, %v2481_v12 }
  0xe4   :  { %132 = vadd.xlane.f32.xlu1 %v129_v13 }
 0x169   :  { %v131_v36 = vpop.xlane.xlu1 %130 }
 0x16a   :  { %v134_v37 = vmul.f32 0.0078125, %v131_v36 }
 0x16c   :  { %v136_v38 = vadd.f32 1e-05, %v134_v37 }
 0x16d   :  { %v133_v39 = vpop.xlane.xlu1 %132 }
 0x16e   :  { %2187 = vrsqrt.f32 %v136_v38  ;;  %v135_v40 = vmul.f32 0.0078125, %v133_v39 }
 0x170   :  { %v137_v41 = vadd.f32 1e-05, %v135_v40 }
 0x172   :  { %2189 = vrsqrt.f32 %v137_v41 }
 0x17b   :  { %v2188_v42 = vpop.eup %2187 }
 0x17c   :  { %v140_v43 = vmul.f32 %v2188_v42, %v2476_v8 }
 0x17e   :  { %v146_v47 = vmul.f32 %v1766_v44, %v140_v43 }
 0x17f   :  { %v2190_v45 = vpop.eup %2189 }
 0x180   :  { %v141_v46 = vmul.f32 %v2190_v45, %v2481_v12  ;;  %v152_v50 = vadd.f32 %v1767_v48, %v146_v47 }
 0x182   :  { %v147_v49 = vmul.f32 %v1766_v44, %v141_v46 }
 0x184   :  { %v153_v51 = vadd.f32 %v1767_v48, %v147_v49 }
 0x186   :  { %v154_v52 = vpack.c.bf16 %v153_v51, %v152_v50 }
 0x188   :  { %365 = vmatmul.mubr.bf16.vlgmr.msra.gmra.mxu0 %v154_v52  ;;  %1974 = vmatmul.mubr.bf16.vlgmr.msra.gmra.mxu1 %v154_v52 }
 0x189   :  { %1979 = vmatprep.mubr.msk.bf16.mxu0 %vm2393_vm0, %v2391_v4  ;;  %1985 = vmatprep.mubr.msk.bf16.mxu1 %vm2393_vm0, %v2391_v4 }
 0x248   :  { %v366_v59 = vpop.f32.mrf.mxu0  ;;  %v409_v60 = vpop.f32.mrf.mxu1 }
 0x249   :  { %v410_v11 = vadd.f32 %v409_v60, %v200_v2  ;;  %v367_v14 = vadd.f32 %v366_v59, %v192_v7 }
 0x24a   :  { %v368_v62 = vpop.f32.mrf.mxu0  ;;  %v1975_v63 = vpop.f32.mrf.mxu1 }
 0x24b   :  { %v369_v3 = vadd.f32 %v368_v62, %v196_v58  ;;  %v2518_v16 = vpack.c.bf16 %v410_v11, %v410_v11  ;;  %v416_v19 = vpack.c.bf16 %v367_v14, %v367_v14 }
 0x24c   :  { %v370_v5 = vpop.f32.mrf.mxu0  ;;  %v412_v6 = vpop.f32.mrf.mxu1 }
 0x24d   :  { %v418_v8 = vpack.c.bf16 %v369_v3, %v369_v3  ;;  %v413_v17 = vadd.f32 %v412_v6, %v200_v2  ;;  %v371_v20 = vadd.f32 %v370_v5, %v192_v7  ;;  %v545_v21 = vsel %vm543_vm2, %v2518_v16, 0 }
 0x24e   :  { %v372_v9 = vpop.f32.mrf.mxu0  ;;  %v1976_v10 = vpop.f32.mrf.mxu1 }
 0x24f   :  { %v425_v12 = vsel %vm420_vm1, %v418_v8, 0  ;;  %v373_v13 = vadd.f32 %v372_v9, %v196_v58  ;;  %v2524_v22 = vpack.c.bf16 %v413_v17, %v413_v17  ;;  %v417_v23 = vpack.c.bf16 %v371_v20, %v371_v20 }
 0x250   :  { %1978 = vmatpush3.bf16.xpose.msra.mxu0 %v425_v12 }
 0x251   :  { %v419_v15 = vpack.c.bf16 %v373_v13, %v373_v13  ;;  %1989 = vmatprep.subr.bf16.mxu0 %v2391_v4  ;;  %v591_v24 = vsel %vm543_vm2, %v2524_v22, 0 }
 0x253   :  { %v471_v18 = vsel %vm420_vm1, %v419_v15, 0 }
 0x254   :  { %1984 = vmatpush3.bf16.xpose.msra.mxu1 %v471_v18 }
 0x255   :  { %1995 = vmatprep.subr.bf16.mxu1 %v2391_v4 }
 0x257   :  { %1980 = vmatmul.mubr.msk.bf16.vlgmr.msra.gmra.mxu0 %vm420_vm1, %v416_v19 }
 0x258   :  { %1990 = vmatpush3.bf16.msra.mxu0 %v545_v21  ;;  %1991 = vmatprep.mubr.msk.bf16.mxu0 %vm2393_vm0, %v2391_v4 }
 0x259   :  { %2001 = vmatprep.subr.bf16.mxu0 %v2391_v4 }
 0x25b   :  { %1986 = vmatmul.mubr.msk.bf16.vlgmr.msra.gmra.mxu1 %vm420_vm1, %v417_v23 }
 0x25c   :  { %1996 = vmatpush3.bf16.msra.mxu1 %v591_v24  ;;  %1997 = vmatprep.mubr.msk.bf16.mxu1 %vm2393_vm0, %v2391_v4 }
 0x25d   :  { %2007 = vmatprep.subr.bf16.mxu1 %v2391_v4 }
 0x317   :  { %v461_v25 = vpop.f32.mrf.mxu0 }
 0x318   :  { %v514_v26 = vsel %vm513_vm3, %v461_v25, -inf }
 0x319   :  { %515 = vmax.xlane.f32.xlu0 %v514_v26  ;;  %v1981_v28 = vpop.f32.mrf.mxu0 }
 0x31b   :  { %v464_v29 = vpop.f32.mrf.mxu0  ;;  %v507_v30 = vpop.f32.mrf.mxu1 }
 0x31c   :  { %v517_v31 = vsel %vm513_vm3, %v507_v30, -inf }
 0x31d   :  { %518 = vmax.xlane.f32.xlu1 %v517_v31  ;;  %v1982_v32 = vpop.f32.mrf.mxu0  ;;  %v1987_v33 = vpop.f32.mrf.mxu1 }
 0x31f   :  { %v510_v34 = vpop.f32.mrf.mxu1 }
 0x321   :  { %v1988_v35 = vpop.f32.mrf.mxu1 }
 0x32e   :  { %698 = vrot.lane.b32.xlu1 %v419_v15, %s2379_s13 }
 0x3a2   :  { %v516_v36 = vpop.xlane.xlu0 %515 }
 0x3a3   :  { %v520_v37 = vsub.f32 %v461_v25, %v516_v36 }
 0x3a5   :  { %v522_v38 = vmul.f32 1.442695, %v520_v37 }
 0x3a6   :  { %v519_v39 = vpop.xlane.xlu1 %518 }
 0x3a7   :  { %2191 = vpow2.f32 %v522_v38  ;;  %v521_v40 = vsub.f32 %v507_v30, %v519_v39 }
 0x3a9   :  { %v524_v41 = vmul.f32 1.442695, %v521_v40 }
 0x3aa   :  { %v699_v46 = vpop.permute.xlu1 %698 }
 0x3ab   :  { %2193 = vpow2.f32 %v524_v41  ;;  %v704_v60 = vsel %vm420_vm1, %v699_v46, 0  ;;  %v2099_v46 = vld [vmem:[#allocation8 + $0x18] sm:$0xff]  }
 0x3b4   :  { %v2192_v42 = vpop.eup %2191 }
 0x3b5   :  { %v526_v43 = vsel %vm513_vm3, %v2192_v42, 0.0 }
 0x3b6   :  { %527 = vadd.xlane.f32.xlu0 %v526_v43 }
 0x3b8   :  { %v2194_v44 = vpop.eup %2193 }
 0x3b9   :  { %v529_v45 = vsel %vm513_vm3, %v2194_v44, 0.0 }
 0x3ba   :  { %530 = vadd.xlane.f32.xlu1 %v529_v45 }
 0x3cb   :  { %643 = vrot.lane.b32.xlu1 %v416_v19, %s2379_s13 }
 0x3cc   :  { %646 = vrot.lane.b32.xlu0 %v418_v8, %s2379_s13 }
 0x3cf   :  { %695 = vrot.lane.b32.xlu1 %v417_v23, %s2379_s13 }
 0x43f   :  { %v528_v47 = vpop.xlane.xlu0 %527 }
 0x440   :  { %2195 = vrcp.f32 %v528_v47  ;;  %v2104_v47 = vld [vmem:[#allocation8 + $0x30] sm:$0xff]  }
 0x443   :  { %v531_v48 = vpop.xlane.xlu1 %530  ;;  %v647_v51 = vpop.permute.xlu0 %646 }
 0x444   :  { %2197 = vrcp.f32 %v531_v48  ;;  %v652_v56 = vsel %vm420_vm1, %v647_v51, 0  ;;  %v2100_v48 = vld [vmem:[#allocation8 + $0x10] sm:$0xff]   ;;  %v2105_v51 = vld [vmem:[#allocation8 + $0x28] sm:$0xff]  }
 0x447   :  { %v644_v62 = vpop.permute.xlu1 %643 }
 0x44b   :  { %v696_v63 = vpop.permute.xlu1 %695 }
 0x44d   :  { %v2196_v49 = vpop.eup %2195 }
 0x44e   :  { %v534_v50 = vmul.f32 %v2196_v49, %v2192_v42  ;;  %v2103_v42 = vld [vmem:[#allocation8 + $0x38] sm:$0xff]   ;;  %v2101_v49 = vld [vmem:[#allocation8 + $0x8] sm:$0xff]  }
 0x450   :  { %v536_v52 = vpack.c.bf16 %v534_v50, %v534_v50  ;;  %v2102_v50 = vld [vmem:[#allocation8] sm:$0xff]  }
 0x451   :  { %v2198_v53 = vpop.eup %2197 }
 0x452   :  { %1992 = vmatmul.mubr.msk.bf16.vlgmr.msra.gmra.mxu0 %vm513_vm3, %v536_v52  ;;  %v535_v58 = vmul.f32 %v2198_v53, %v2194_v44  ;;  %v2106_v52 = vld [vmem:[#allocation8 + $0x20] sm:$0xff]  }
 0x453   :  { %2002 = vmatpush3.bf16.xpose.msra.mxu0 %v652_v56  ;;  %2003 = vmatprep.mubr.msk.bf16.mxu0 %vm2393_vm0, %v2391_v4 }
 0x454   :  { %v537_v59 = vpack.c.bf16 %v535_v58, %v535_v58  ;;  %2013 = vmatprep.subr.bf16.mxu0 %v2391_v4 }
 0x456   :  { %1998 = vmatmul.mubr.msk.bf16.vlgmr.msra.gmra.mxu1 %vm513_vm3, %v537_v59 }
 0x457   :  { %2008 = vmatpush3.bf16.xpose.msra.mxu1 %v704_v60  ;;  %2009 = vmatprep.mubr.msk.bf16.mxu1 %vm2393_vm0, %v2391_v4 }
 0x458   :  { %2019 = vmatprep.subr.bf16.mxu1 %v2391_v4 }
 0x45a   :  { %2004 = vmatmul.mubr.msk.bf16.vlgmr.msra.gmra.mxu0 %vm420_vm1, %v644_v62 }
 0x45b   :  { %2015 = vmatprep.mubr.msk.bf16.mxu0 %vm2393_vm0, %v2391_v4 }
 0x45e   :  { %2010 = vmatmul.mubr.msk.bf16.vlgmr.msra.gmra.mxu1 %vm420_vm1, %v696_v63 }
 0x45f   :  { %2021 = vmatprep.mubr.msk.bf16.mxu1 %vm2393_vm0, %v2391_v4 }
 0x512   :  { %v2560_v2 = vpop.f32.mrf.mxu0 }
 0x514   :  { %v1993_v3 = vpop.f32.mrf.mxu0 }
 0x516   :  { %v584_v5 = vpop.f32.mrf.mxu0  ;;  %v2562_v6 = vpop.f32.mrf.mxu1 }
 0x517   :  { %v633_v7 = vpack.c.bf16 %v2562_v6, %v2560_v2 }
 0x518   :  { %v1994_v8 = vpop.f32.mrf.mxu0  ;;  %v1999_v9 = vpop.f32.mrf.mxu1 }
 0x51a   :  { %v630_v10 = vpop.f32.mrf.mxu1  ;;  %v688_v11 = vpop.f32.mrf.mxu0 }
 0x51b   :  { %v746_v12 = vsel %vm513_vm3, %v688_v11, -inf }
 0x51c   :  { %v2000_v13 = vpop.f32.mrf.mxu1  ;;  %747 = vmax.xlane.f32.xlu0 %v746_v12  ;;  %v2005_v14 = vpop.f32.mrf.mxu0 }
 0x51e   :  { %v691_v15 = vpop.f32.mrf.mxu0  ;;  %v740_v17 = vpop.f32.mrf.mxu1 }
 0x51f   :  { %v749_v18 = vsel %vm513_vm3, %v740_v17, -inf }
 0x520   :  { %750 = vmax.xlane.f32.xlu1 %v749_v18  ;;  %v2006_v19 = vpop.f32.mrf.mxu0  ;;  %v2011_v20 = vpop.f32.mrf.mxu1 }
 0x521   :  { %v2107_v19 = vld [vmem:[#allocation10 + $0xe0] ss:$16 sps:$4 sm:$0xff]   ;;  %v2109_v20 = vld [vmem:[#allocation10 + $0xe4] ss:$16 sps:$4 sm:$0xff]  }
 0x522   :  { %v743_v21 = vpop.f32.mrf.mxu1 }
 0x523   :  { %v2110_v21 = vld [vmem:[#allocation10 + $0xe8] ss:$16 sps:$4 sm:$0xff]  }
 0x524   :  { %v2012_v23 = vpop.f32.mrf.mxu1 }
 0x525   :  { %v2112_v23 = vld [vmem:[#allocation10 + $0xec] ss:$16 sps:$4 sm:$0xff]  }
 0x531   :  { %820 = vrot.lane.b32.xlu1 %v2524_v22, %s2379_s13 }
 0x5a5   :  { %v748_v24 = vpop.xlane.xlu0 %747 }
 0x5a6   :  { %v752_v25 = vsub.f32 %v688_v11, %v748_v24 }
 0x5a8   :  { %v754_v26 = vmul.f32 1.442695, %v752_v25 }
 0x5a9   :  { %v751_v28 = vpop.xlane.xlu1 %750 }
 0x5aa   :  { %2199 = vpow2.f32 %v754_v26  ;;  %v753_v29 = vsub.f32 %v740_v17, %v751_v28 }
 0x5ac   :  { %v756_v30 = vmul.f32 1.442695, %v753_v29 }
 0x5ad   :  { %v821_v31 = vpop.permute.xlu1 %820 }
 0x5ae   :  { %2201 = vpow2.f32 %v756_v30  ;;  %v826_v32 = vsel %vm543_vm2, %v821_v31, 0  ;;  %v2115_v31 = vld [vmem:[#allocation10 + $0xc4] ss:$16 sps:$4 sm:$0xff]  }
 0x5af   :  { %2020 = vmatpush3.bf16.msra.mxu1 %v826_v32  ;;  %v2118_v32 = vld [vmem:[#allocation10 + $0xcc] ss:$16 sps:$4 sm:$0xff]  }
 0x5b0   :  { %2037 = vmatprep.subr.bf16.mxu1 %v2391_v4 }
 0x5b7   :  { %v2200_v33 = vpop.eup %2199 }
 0x5b8   :  { %v758_v34 = vsel %vm513_vm3, %v2200_v33, 0.0 }
 0x5b9   :  { %759 = vadd.xlane.f32.xlu0 %v758_v34  ;;  %v2116_v34 = vld [vmem:[#allocation10 + $0xc8] ss:$16 sps:$4 sm:$0xff]  }
 0x5bb   :  { %v2202_v35 = vpop.eup %2201 }
 0x5bc   :  { %v761_v22 = vsel %vm513_vm3, %v2202_v35, 0.0 }
 0x5bd   :  { %762 = vadd.xlane.f32.xlu0 %v761_v22  ;;  %v2124_v22 = vld [vmem:[#allocation10 + $0xac] ss:$16 sps:$4 sm:$0xff]  }
 0x5d3   :  { %771 = vrot.lane.b32.xlu0 %v2518_v16, %s2379_s13 }
 0x642   :  { %v760_v36 = vpop.xlane.xlu0 %759 }
 0x643   :  { %2203 = vrcp.f32 %v760_v36  ;;  %v2119_v36 = vld [vmem:[#allocation10 + $0xa0] ss:$16 sps:$4 sm:$0xff]  }
 0x646   :  { %v763_v37 = vpop.xlane.xlu0 %762 }
 0x647   :  { %2205 = vrcp.f32 %v763_v37  ;;  %v2122_v37 = vld [vmem:[#allocation10 + $0xa8] ss:$16 sps:$4 sm:$0xff]  }
 0x64a   :  { %v772_v38 = vpop.permute.xlu0 %771 }
 0x64b   :  { %v777_v39 = vsel %vm543_vm2, %v772_v38, 0  ;;  %v2125_v38 = vld [vmem:[#allocation10 + $0x80] ss:$16 sps:$4 sm:$0xff]  }
 0x64c   :  { %2014 = vmatpush3.bf16.msra.mxu0 %v777_v39  ;;  %v2127_v39 = vld [vmem:[#allocation10 + $0x84] ss:$16 sps:$4 sm:$0xff]  }
 0x64d   :  { %2025 = vmatprep.subr.bf16.mxu0 %v2391_v4 }
 0x650   :  { %v2204_v40 = vpop.eup %2203 }
 0x651   :  { %v766_v41 = vmul.f32 %v2204_v40, %v2200_v33  ;;  %v2113_v33 = vld [vmem:[#allocation10 + $0xc0] ss:$16 sps:$4 sm:$0xff]   ;;  %v2128_v40 = vld [vmem:[#allocation10 + $0x88] ss:$16 sps:$4 sm:$0xff]  }
 0x653   :  { %v768_v43 = vpack.c.bf16 %v766_v41, %v766_v41  ;;  %v2130_v41 = vld [vmem:[#allocation10 + $0x8c] ss:$16 sps:$4 sm:$0xff]  }
 0x654   :  { %v2206_v44 = vpop.eup %2205 }
 0x655   :  { %2016 = vmatmul.mubr.msk.bf16.vlgmr.msra.gmra.mxu0 %vm513_vm3, %v768_v43  ;;  %v767_v45 = vmul.f32 %v2206_v44, %v2202_v35  ;;  %v2121_v35 = vld [vmem:[#allocation10 + $0xa4] ss:$16 sps:$4 sm:$0xff]   ;;  %v2136_v43 = vld [vmem:[#allocation10 + $0x6c] ss:$16 sps:$4 sm:$0xff]   ;;  %v2131_v44 = vld [vmem:[#allocation10 + $0x60] ss:$16 sps:$4 sm:$0xff]  }
 0x656   :  { %2026 = vmatpush3.bf16.msra.mxu0 %v2103_v42  ;;  %2033 = vmatprep.mubr.msk.bf16.mxu0 %vm2393_vm0, %v2391_v4  ;;  %v2133_v42 = vld [vmem:[#allocation10 + $0x64] ss:$16 sps:$4 sm:$0xff]  }
 0x657   :  { %v769_v16 = vpack.c.bf16 %v767_v45, %v767_v45  ;;  %2027 = vmatprep.subr.bf16.mxu0 %v2391_v4  ;;  %v2134_v45 = vld [vmem:[#allocation10 + $0x68] ss:$16 sps:$4 sm:$0xff]  }
 0x659   :  { %2022 = vmatmul.mubr.msk.bf16.vlgmr.msra.gmra.mxu1 %vm513_vm3, %v769_v16  ;;  %v2142_v16 = vld [vmem:[#allocation10 + $0x4c] ss:$16 sps:$4 sm:$0xff]  }
 0x65a   :  { %2038 = vmatpush3.bf16.msra.mxu1 %v2099_v46  ;;  %2045 = vmatprep.mubr.msk.bf16.mxu1 %vm2393_vm0, %v2391_v4  ;;  %v2139_v46 = vld [vmem:[#allocation10 + $0x44] ss:$16 sps:$4 sm:$0xff]  }
 0x65b   :  { %2039 = vmatprep.subr.bf16.mxu1 %v2391_v4  ;;  %2028 = vmatpush3.bf16.msra.mxu0 %v2104_v47  ;;  %v2137_v47 = vld [vmem:[#allocation10 + $0x40] ss:$16 sps:$4 sm:$0xff]  }
 0x65c   :  { %2029 = vmatprep.subr.bf16.mxu0 %v2391_v4 }
 0x65e   :  { %2040 = vmatpush3.bf16.msra.mxu1 %v2100_v48  ;;  %v2140_v48 = vld [vmem:[#allocation10 + $0x48] ss:$16 sps:$4 sm:$0xff]  }
 0x65f   :  { %2041 = vmatprep.subr.bf16.mxu1 %v2391_v4  ;;  %2030 = vmatpush3.bf16.msra.mxu0 %v2105_v51  ;;  %v2143_v51 = vld [vmem:[#allocation10 + $0x20] ss:$16 sps:$4 sm:$0xff]  }
 0x660   :  { %2031 = vmatprep.subr.bf16.mxu0 %v2391_v4 }
 0x662   :  { %2042 = vmatpush3.bf16.msra.mxu1 %v2101_v49  ;;  %v2145_v49 = vld [vmem:[#allocation10 + $0x24] ss:$16 sps:$4 sm:$0xff]  }
 0x663   :  { %2043 = vmatprep.subr.bf16.mxu1 %v2391_v4  ;;  %2032 = vmatpush3.bf16.msra.mxu0 %v2106_v52  ;;  %v1810_v4 = vld [vmem:[#allocation5 + $0x4] ss:$0 sm:$0xff]  ;;  %v2146_v52 = vld [vmem:[#allocation10 + $0x28] ss:$16 sps:$4 sm:$0xff]  }
 0x664   :  { %1270 = vmatprep.subr.bf16.mxu0 %v2109_v20  ;;  %v2157_v20 = vld [vmem:[#allocation11 + $0x38] sm:$0xff]  }
 0x666   :  { %2044 = vmatpush3.bf16.msra.mxu1 %v2102_v50  ;;  %v2148_v50 = vld [vmem:[#allocation10 + $0x2c] ss:$16 sps:$4 sm:$0xff]  }
 0x667   :  { %1313 = vmatprep.subr.bf16.mxu1 %v2112_v23  ;;  %v2159_v23 = vld [vmem:[#allocation11 + $0x70] sm:$0xff]  }
 0x669   :  { %2046 = vmatmul.mubr.msk.bf16.vlgmr.msra.gmra.mxu1 %vm420_vm1, %v633_v7 }
 0x66a   :  { %1345 = vmatprep.mubr.bf16.mxu1 %v2392_v27  ;;  %1314 = vmatpush1.bf16.msra.mxu1 %v2110_v21  ;;  %v2158_v21 = vld [vmem:[#allocation11 + $0xb8] sm:$0xff]  }
 0x66b   :  { %1315 = vmatprep.subr.bf16.mxu1 %v2118_v32  ;;  %v2169_v32 = vld [vmem:[#allocation11 + $0x20] sm:$0xff]  }
 0x66e   :  { %1316 = vmatpush1.bf16.msra.mxu1 %v2116_v34  ;;  %v2171_v34 = vld [vmem:[#allocation11 + $0x58] sm:$0xff]  }
 0x66f   :  { %1317 = vmatprep.subr.bf16.mxu1 %v2124_v22  ;;  %v2173_v22 = vld [vmem:[#allocation11 + $0x18] sm:$0xff]  }
 0x672   :  { %1318 = vmatpush1.bf16.msra.mxu1 %v2122_v37  ;;  %v2175_v37 = vld [vmem:[#allocation11 + $0x50] sm:$0xff]  }
 0x673   :  { %1319 = vmatprep.subr.bf16.mxu1 %v2130_v41  ;;  %v2179_v41 = vld [vmem:[#allocation11 + $0x48] sm:$0xff]  }
 0x676   :  { %1320 = vmatpush1.bf16.msra.mxu1 %v2128_v40  ;;  %v2178_v40 = vld [vmem:[#allocation11 + $0x90] sm:$0xff]  }
 0x677   :  { %1321 = vmatprep.subr.bf16.mxu1 %v2136_v43  ;;  %v2181_v43 = vld [vmem:[#allocation11 + $0x8] sm:$0xff]  }
 0x67a   :  { %1322 = vmatpush1.bf16.msra.mxu1 %v2134_v45  ;;  %v2183_v45 = vld [vmem:[#allocation11 + $0x40] sm:$0xff]  }
 0x67b   :  { %1323 = vmatprep.subr.bf16.mxu1 %v2142_v16  ;;  %v2185_v16 = vld [vmem:[#allocation11] sm:$0xff]  }
 0x67e   :  { %1324 = vmatpush1.bf16.msra.mxu1 %v2140_v48  ;;  %v1088_v48 = vld [vmem:[%s2641_s6] sm:$0xf]  ;;  %s2394_s6 = smov [#allocation13]  }
 0x67f   :  { %1325 = vmatprep.subr.bf16.mxu1 %v2148_v50  ;;  %v1093_v50 = vrot.slane %v1088_v48, %v191_v61  ;;  %s1751_s14 = sshll.u32 %s2394_s6, 4  ;;  %s1752_s14 = int_to_ptr.vmem [resolvable:$true] %s1751_s14 }
 0x680   :  { %s2347_s1 = scalar_lea.vmem %s1752_s14, 256  ;;  %p2352_p3 = scmp.lt.s32.totalorder %s1752_s14, %s1752_s14 }
 0x681   :  { %p2348_p2 = scmp.ne.s32.totalorder %s1752_s14, %s2347_s1  ;;  %p2353_p4 = scmp.lt.s32.totalorder %s2347_s1, %s2347_s1 }
 0x682   :  { %1326 = vmatpush1.bf16.msra.mxu1 %v2146_v52 }
 0x683   :  { %p2354_p5 = por %p2353_p4, %p2352_p3 }
 0x685   :  { %p2355_p6 = pnand %p2354_p5, %p2348_p2 }
 0x715   :  { %v813_v53 = vpop.f32.mrf.mxu0 }
 0x717   :  { %v2017_v56 = vpop.f32.mrf.mxu0 }
 0x718   :  { %v2154_v56 = vld [vmem:[#allocation10 + $0xc] ss:$16 sps:$4 sm:$0xff]  }
 0x719   :  { %v816_v58 = vpop.f32.mrf.mxu0  ;;  %v862_v59 = vpop.f32.mrf.mxu1  ;;  %1327 = vmatprep.subr.bf16.mxu1 %v2154_v56  ;;  %v1097_v56 = vrot.slane %v1088_v48, %v195_v55 }
 0x71a   :  { %v868_v60 = vpack.c.bf16 %v862_v59, %v813_v53  ;;  %v2151_v53 = vld [vmem:[#allocation10 + $0x4] ss:$16 sps:$4 sm:$0xff]   ;;  %v2149_v58 = vld [vmem:[#allocation10] ss:$16 sps:$4 sm:$0xff]   ;;  %v2152_v59 = vld [vmem:[#allocation10 + $0x8] ss:$16 sps:$4 sm:$0xff]  }
 0x71b   :  { %v2018_v62 = vpop.f32.mrf.mxu0  ;;  %v2023_v63 = vpop.f32.mrf.mxu1  ;;  %1328 = vmatpush1.bf16.msra.mxu1 %v2152_v59 }
 0x71c   :  { %2034 = vmatmul.mubr.msk.bf16.vlgmr.msra.gmra.mxu0 %vm420_vm1, %v868_v60 }
 0x71d   :  { %v865_v2 = vpop.f32.mrf.mxu1  ;;  %1302 = vmatprep.mubr.bf16.mxu0 %v2392_v27  ;;  %1271 = vmatpush1.bf16.msra.mxu0 %v2107_v19  ;;  %v2156_v19 = vld [vmem:[#allocation11 + $0xf8] sm:$0xff]  }
 0x71e   :  { %1272 = vmatprep.subr.bf16.mxu0 %v2115_v31  ;;  %1935 = vmatprep.subr.bf16.mxu1 %v2156_v19  ;;  %v2168_v31 = vld [vmem:[#allocation11 + $0xe0] sm:$0xff]  }
 0x71f   :  { %v2024_v3 = vpop.f32.mrf.mxu1 }
 0x721   :  { %1273 = vmatpush1.bf16.msra.mxu0 %v2113_v33  ;;  %v2170_v33 = vld [vmem:[#allocation11 + $0xa0] sm:$0xff]  }
 0x722   :  { %1274 = vmatprep.subr.bf16.mxu0 %v2121_v35  ;;  %v2172_v35 = vld [vmem:[#allocation11 + $0xd8] sm:$0xff]  }
 0x725   :  { %1275 = vmatpush1.bf16.msra.mxu0 %v2119_v36  ;;  %v2174_v36 = vld [vmem:[#allocation11 + $0x98] sm:$0xff]  }
 0x726   :  { %1276 = vmatprep.subr.bf16.mxu0 %v2127_v39  ;;  %v2177_v39 = vld [vmem:[#allocation11 + $0x10] sm:$0xff]  }
 0x729   :  { %v1006_v5 = vpop.f32.mrf.mxu1  ;;  %1277 = vmatpush1.bf16.msra.mxu0 %v2125_v38  ;;  %v2176_v38 = vld [vmem:[#allocation11 + $0xd0] sm:$0xff]  }
 0x72a   :  { %1278 = vmatprep.subr.bf16.mxu0 %v2133_v42  ;;  %v2180_v42 = vld [vmem:[#allocation11 + $0xc8] sm:$0xff]  }
 0x72b   :  { %v2047_v6 = vpop.f32.mrf.mxu1 }
 0x72d   :  { %v1009_v7 = vpop.f32.mrf.mxu1  ;;  %1279 = vmatpush1.bf16.msra.mxu0 %v2131_v44  ;;  %v2182_v44 = vld [vmem:[#allocation11 + $0x88] sm:$0xff]  }
 0x72e   :  { %1280 = vmatprep.subr.bf16.mxu0 %v2139_v46  ;;  %v2184_v46 = vld [vmem:[#allocation11 + $0xc0] sm:$0xff]  }
 0x72f   :  { %v2048_v8 = vpop.f32.mrf.mxu1 }
 0x730   :  { %v1811_v8 = vld [vmem:[#allocation5 + $0x2] ss:$0 sm:$0xff] }
 0x731   :  { %1281 = vmatpush1.bf16.msra.mxu0 %v2137_v47  ;;  %v2186_v47 = vld [vmem:[#allocation11 + $0x80] sm:$0xff]  }
 0x732   :  { %1282 = vmatprep.subr.bf16.mxu0 %v2145_v49  ;;  %v1104_v49 = vsub.s32 3, %v2502_v54 }
 0x735   :  { %1283 = vmatpush1.bf16.msra.mxu0 %v2143_v51  ;;  %v1101_v51 = vrot.slane %v1088_v48, %v199_v57 }
 0x736   :  { %1284 = vmatprep.subr.bf16.mxu0 %v2151_v53 }
 0x739   :  { %1285 = vmatpush1.bf16.msra.mxu0 %v2149_v58  ;;  %v1105_v58 = vrot.slane %v1088_v48, %v1104_v49 }
 0x7dc   :  { %v938_v9 = vpop.f32.mrf.mxu0 }
 0x7dd   :  { %v1007_v10 = vadd.f32 %v1006_v5, %v938_v9 }
 0x7de   :  { %v2035_v11 = vpop.f32.mrf.mxu0 }
 0x7df   :  { %v1017_v12 = vadd.f32 %v1810_v4, %v1007_v10  ;;  %v1812_v11 = vld [vmem:[#allocation5 + $0x3] ss:$0 sm:$0xff] }
 0x7e0   :  { %v941_v13 = vpop.f32.mrf.mxu0 }
 0x7e1   :  { %v1010_v14 = vadd.f32 %v1009_v7, %v941_v13  ;;  %v2598_v15 = vadd.f32 %v1017_v12, %v2467_v0 }
 0x7e2   :  { %v2036_v17 = vpop.f32.mrf.mxu0 }
 0x7e3   :  { %v1018_v18 = vadd.f32 %v1810_v4, %v1010_v14  ;;  %1021 = vadd.xlane.f32.xlu1 %v2598_v15 }
 0x7e5   :  { %v2602_v27 = vadd.f32 %v1018_v18, %v2469_v1  ;;  %v2155_v18 = vld [vmem:[#allocation11 + $0x78] sm:$0xff]  }
 0x7e6   :  { %1913 = vmatprep.subr.bf16.mxu0 %v2155_v18 }
 0x7e7   :  { %1023 = vadd.xlane.f32.xlu0 %v2602_v27 }
 0x86c   :  { %v1022_v24 = vpop.xlane.xlu1 %1021 }
 0x86d   :  { %v1025_v0 = vmul.f32 0.0078125, %v1022_v24  ;;  %v2160_v24 = vld [vmem:[#allocation11 + $0xf0] sm:$0xff]  }
 0x86f   :  { %v2606_v25 = vsub.f32 %v2598_v15, %v1025_v0  ;;  %v2161_v0 = vld [vmem:[#allocation11 + $0x30] sm:$0xff]  }
 0x870   :  { %v1024_v26 = vpop.xlane.xlu0 %1023 }
 0x871   :  { %v1026_v28 = vmul.f32 0.0078125, %v1024_v26  ;;  %v1029_v1 = vmul.f32 %v2606_v25, %v2606_v25  ;;  %v2163_v26 = vld [vmem:[#allocation11 + $0x68] sm:$0xff]  }
 0x873   :  { %v2611_v29 = vsub.f32 %v2602_v27, %v1026_v28  ;;  %1031 = vadd.xlane.f32.xlu0 %v1029_v1  ;;  %v2164_v28 = vld [vmem:[#allocation11 + $0xe8] sm:$0xff]  }
 0x874   :  { %v2165_v1 = vld [vmem:[#allocation11 + $0x28] sm:$0xff]  }
 0x875   :  { %v1030_v30 = vmul.f32 %v2611_v29, %v2611_v29 }
 0x877   :  { %1033 = vadd.xlane.f32.xlu1 %v1030_v30  ;;  %v2167_v30 = vld [vmem:[#allocation11 + $0x60] sm:$0xff]  }
 0x8fc   :  { %v1032_v60 = vpop.xlane.xlu0 %1031 }
 0x8fd   :  { %v1035_v62 = vmul.f32 0.0078125, %v1032_v60 }
 0x8ff   :  { %v1037_v63 = vadd.f32 1e-05, %v1035_v62 }
 0x900   :  { %v1034_v2 = vpop.xlane.xlu1 %1033 }
 0x901   :  { %2207 = vrsqrt.f32 %v1037_v63  ;;  %v1036_v3 = vmul.f32 0.0078125, %v1034_v2 }
 0x903   :  { %v1038_v5 = vadd.f32 1e-05, %v1036_v3 }
 0x905   :  { %2209 = vrsqrt.f32 %v1038_v5 }
 0x90e   :  { %v2208_v6 = vpop.eup %2207 }
 0x90f   :  { %v1041_v7 = vmul.f32 %v2208_v6, %v2606_v25  ;;  %v2162_v25 = vld [vmem:[#allocation11 + $0xb0] sm:$0xff]  }
 0x911   :  { %v1047_v10 = vmul.f32 %v1811_v8, %v1041_v7 }
 0x912   :  { %v2210_v4 = vpop.eup %2209 }
 0x913   :  { %v1042_v9 = vmul.f32 %v2210_v4, %v2611_v29  ;;  %v1053_v13 = vadd.f32 %v1812_v11, %v1047_v10  ;;  %v2166_v29 = vld [vmem:[#allocation11 + $0xa8] sm:$0xff]  }
 0x915   :  { %v1048_v12 = vmul.f32 %v1811_v8, %v1042_v9 }
 0x917   :  { %v1054_v14 = vadd.f32 %v1812_v11, %v1048_v12 }
 0x919   :  { %v1055_v17 = vpack.c.bf16 %v1054_v14, %v1053_v13 }
 0x91b   :  { %1303 = vmatmul.mubr.bf16.vlgmr.msra.gmra.mxu0 %v1055_v17  ;;  %1346 = vmatmul.mubr.bf16.vlgmr.msra.gmra.mxu1 %v1055_v17 }
 0x91c   :  { %1914 = vmatpush3.bf16.msra.mxu0 %v2157_v20  ;;  %1936 = vmatpush3.bf16.msra.mxu1 %v2158_v21 }
 0x91d   :  { %1915 = vmatprep.subr.bf16.mxu0 %v2159_v23  ;;  %1937 = vmatprep.subr.bf16.mxu1 %v2160_v24 }
 0x920   :  { %1916 = vmatpush3.bf16.msra.mxu0 %v2161_v0  ;;  %1938 = vmatpush3.bf16.msra.mxu1 %v2162_v25 }
 0x921   :  { %1917 = vmatprep.subr.bf16.mxu0 %v2163_v26  ;;  %1939 = vmatprep.subr.bf16.mxu1 %v2164_v28 }
 0x924   :  { %1918 = vmatpush3.bf16.msra.mxu0 %v2165_v1  ;;  %1940 = vmatpush3.bf16.msra.mxu1 %v2166_v29 }
 0x925   :  { %1919 = vmatprep.subr.bf16.mxu0 %v2167_v30  ;;  %1941 = vmatprep.subr.bf16.mxu1 %v2168_v31 }
 0x928   :  { %1920 = vmatpush3.bf16.msra.mxu0 %v2169_v32  ;;  %1942 = vmatpush3.bf16.msra.mxu1 %v2170_v33 }
 0x929   :  { %1921 = vmatprep.subr.bf16.mxu0 %v2171_v34  ;;  %1943 = vmatprep.subr.bf16.mxu1 %v2172_v35 }
 0x92c   :  { %1922 = vmatpush3.bf16.msra.mxu0 %v2173_v22  ;;  %1944 = vmatpush3.bf16.msra.mxu1 %v2174_v36 }
 0x92d   :  { %1923 = vmatprep.subr.bf16.mxu0 %v2175_v37  ;;  %1945 = vmatprep.subr.bf16.mxu1 %v2176_v38 }
 0x930   :  { %1924 = vmatpush3.bf16.msra.mxu0 %v2177_v39  ;;  %1946 = vmatpush3.bf16.msra.mxu1 %v2178_v40 }
 0x931   :  { %1925 = vmatprep.subr.bf16.mxu0 %v2179_v41  ;;  %1947 = vmatprep.subr.bf16.mxu1 %v2180_v42 }
 0x934   :  { %1926 = vmatpush3.bf16.msra.mxu0 %v2181_v43  ;;  %1948 = vmatpush3.bf16.msra.mxu1 %v2182_v44 }
 0x935   :  { %1927 = vmatprep.subr.bf16.mxu0 %v2183_v45  ;;  %1949 = vmatprep.subr.bf16.mxu1 %v2184_v46 }
 0x938   :  { %1928 = vmatpush3.bf16.msra.mxu0 %v2185_v16  ;;  %1950 = vmatpush3.bf16.msra.mxu1 %v2186_v47 }
 0x9db   :  { %v1304_v52 = vpop.f32.mrf.mxu0  ;;  %v1347_v53 = vpop.f32.mrf.mxu1 }
 0x9dc   :  { %v1305_v59 = vadd.f32 %v1304_v52, %v1093_v50  ;;  %v1348_v60 = vadd.f32 %v1347_v53, %v1101_v51 }
 0x9dd   :  { %v1306_v62 = vpop.f32.mrf.mxu0  ;;  %v1349_v63 = vpop.f32.mrf.mxu1 }
 0x9de   :  { %v1364_v2 = vmul.f32 0.70710677, %v1305_v59  ;;  %v1366_v3 = vmul.f32 0.70710677, %v1348_v60  ;;  %v1307_v5 = vadd.f32 %v1306_v62, %v1097_v56  ;;  %v1350_v6 = vadd.f32 %v1349_v63, %v1105_v58 }
 0x9df   :  { %v1308_v7 = vpop.f32.mrf.mxu0  ;;  %v1351_v8 = vpop.f32.mrf.mxu1  ;;  %v1356_v0 = vmul.f32 0.5, %v1305_v59  ;;  %v1358_v41 = vmul.f32 0.5, %v1348_v60 }
 0x9e0   :  { %v1309_v61 = vadd.f32 %v1308_v7, %v1093_v50  ;;  %v1352_v4 = vadd.f32 %v1351_v8, %v1101_v51  ;;  %2211 = verf.f32 %v1364_v2  ;;  %v1365_v57 = vmul.f32 0.70710677, %v1307_v5 }
 0x9e1   :  { %v1310_v9 = vpop.f32.mrf.mxu0  ;;  %v1353_v10 = vpop.f32.mrf.mxu1  ;;  %2213 = verf.f32 %v1366_v3  ;;  %v1367_v54 = vmul.f32 0.70710677, %v1350_v6  ;;  %v1357_v25 = vmul.f32 0.5, %v1307_v5  ;;  %v1359_v37 = vmul.f32 0.5, %v1350_v6 }
 0x9e2   :  { %v1368_v55 = vmul.f32 0.70710677, %v1309_v61  ;;  %2215 = verf.f32 %v1365_v57  ;;  %v1370_v11 = vmul.f32 0.70710677, %v1352_v4  ;;  %v1311_v12 = vadd.f32 %v1310_v9, %v1097_v56  ;;  %v1845_v56 = vld [vmem:[#allocation5 + $0x5] ss:$0 sm:$0xff] }
 0x9e3   :  { %v1354_v13 = vadd.f32 %v1353_v10, %v1105_v58  ;;  %2217 = verf.f32 %v1367_v54  ;;  %v1360_v31 = vmul.f32 0.5, %v1309_v61  ;;  %v1362_v35 = vmul.f32 0.5, %v1352_v4 }
 0x9e4   :  { %2219 = verf.f32 %v1368_v55  ;;  %v1369_v14 = vmul.f32 0.70710677, %v1311_v12  ;;  %v1361_v22 = vmul.f32 0.5, %v1311_v12 }
 0x9e5   :  { %2221 = verf.f32 %v1370_v11  ;;  %v1371_v17 = vmul.f32 0.70710677, %v1354_v13  ;;  %v1363_v39 = vmul.f32 0.5, %v1354_v13 }
 0x9e6   :  { %2223 = verf.f32 %v1369_v14 }
 0x9e7   :  { %2225 = verf.f32 %v1371_v17 }
 0x9ed   :  { %v2212_v18 = vpop.eup %2211 }
 0x9ee   :  { %v2214_v19 = vpop.eup %2213  ;;  %v1380_v29 = vadd.f32 1.0, %v2212_v18 }
 0x9ef   :  { %v2216_v20 = vpop.eup %2215  ;;  %v1382_v34 = vadd.f32 1.0, %v2214_v19 }
 0x9f0   :  { %v2218_v21 = vpop.eup %2217  ;;  %v1381_v26 = vadd.f32 1.0, %v2216_v20  ;;  %v1388_v45 = vmul.f32 %v1380_v29, %v1356_v0 }
 0x9f1   :  { %v2220_v23 = vpop.eup %2219  ;;  %v1383_v30 = vadd.f32 1.0, %v2218_v21  ;;  %v1390_v47 = vmul.f32 %v1382_v34, %v1358_v41 }
 0x9f2   :  { %v2222_v24 = vpop.eup %2221  ;;  %v1384_v28 = vadd.f32 1.0, %v2220_v23  ;;  %v1389_v42 = vmul.f32 %v1381_v26, %v1357_v25 }
 0x9f3   :  { %v2224_v1 = vpop.eup %2223  ;;  %v1386_v32 = vadd.f32 1.0, %v2222_v24  ;;  %v1391_v46 = vmul.f32 %v1383_v30, %v1359_v37 }
 0x9f4   :  { %v2226_v33 = vpop.eup %2225  ;;  %v1385_v36 = vadd.f32 1.0, %v2224_v1  ;;  %v1392_v38 = vmul.f32 %v1384_v28, %v1360_v31 }
 0x9f5   :  { %v1387_v40 = vadd.f32 1.0, %v2226_v33  ;;  %v1394_v43 = vmul.f32 %v1386_v32, %v1362_v35 }
 0x9f6   :  { %v1393_v44 = vmul.f32 %v1385_v36, %v1361_v22  ;;  %v1396_v49 = vpack.c.bf16 %v1392_v38, %v1388_v45 }
 0x9f7   :  { %v1395_v16 = vmul.f32 %v1387_v40, %v1363_v39  ;;  %v1398_v51 = vpack.c.bf16 %v1394_v43, %v1390_v47 }
 0x9f8   :  { %v1397_v48 = vpack.c.bf16 %v1393_v44, %v1389_v42 }
 0x9f9   :  { %v1399_v50 = vpack.c.bf16 %v1395_v16, %v1391_v46 }
 0x9fa   :  { %1692 = vmatprep.mubr.bf16.mxu0 %v1397_v48 }
 0x9fb   :  { %1733 = vmatprep.mubr.bf16.mxu1 %v1399_v50  ;;  %1693 = vmatmul.mubr.bf16.vlgmr.msra.gmra.mxu0 %v1396_v49 }
 0x9fc   :  { %1734 = vmatmul.mubr.bf16.vlgmr.msra.gmra.mxu1 %v1398_v51 }
 0xabb   :  { %v1929_v52 = vpop.f32.mrf.mxu0 }
 0xabc   :  { %v1951_v53 = vpop.f32.mrf.mxu1 }
 0xabd   :  { %v1930_v58 = vpop.f32.mrf.mxu0 }
 0xabe   :  { %v1931_v59 = vadd.f32 %v1930_v58, %v1929_v52  ;;  %v1952_v60 = vpop.f32.mrf.mxu1 }
 0xabf   :  { %v1932_v62 = vpop.f32.mrf.mxu0  ;;  %v1953_v2 = vadd.f32 %v1952_v60, %v1951_v53 }
 0xac0   :  { %v1695_v63 = vadd.f32 %v1931_v59, %v1845_v56  ;;  %v1954_v3 = vpop.f32.mrf.mxu1 }
 0xac1   :  { %v1933_v5 = vpop.f32.mrf.mxu0 }
 0xac2   :  { %v1736_v6 = vadd.f32 %v1953_v2, %v1695_v63  ;;  %v1934_v7 = vadd.f32 %v1933_v5, %v1932_v62  ;;  %v1955_v8 = vpop.f32.mrf.mxu1 }
 0xac3   :  { %v1956_v57 = vadd.f32 %v1955_v8, %v1954_v3 }
 0xac4   :  { %v1742_v61 = vadd.f32 %v1736_v6, %v2598_v15  ;;  %v1698_v4 = vadd.f32 %v1934_v7, %v1845_v56 }
 0xac6   :  { %1744 = vst [vmem:[#allocation13] sm:$0xff] %v1742_v61  ;;  %v1739_v9 = vadd.f32 %v1956_v57, %v1698_v4 }
 0xac8   :  { %v1743_v10 = vadd.f32 %v1739_v9, %v2602_v27 }
 0xaca   :  { %1745 = vst [vmem:[#allocation13 + $0x8] sm:$0xff] %v1743_v10 }
 0xacb   :  { %2358 = shalt.err (!%p2355_p6)
}
 0xacc   :  { %1757 = dma.vmem_to_hbm [thread:$0]  %s1752_s14, 256, %s2643_s8, [#allocation4], %s2382_s19, %s2382_s19, %s2383_s20  }
 0xacd   :  { %2375 = dma.done.wait [#allocation4], 256  }
 0xace   :  { %2376 = vsyncadd [#allocation4], 4294967040 }
 0xacf   :  { %1761 = vsyncpa [#allocation3], 1 }
 0xad0   :  { %1762 = vsyncpa [#allocation6], 1 }
 0xad1   :  { %1763 = vsyncpa [#allocation9], 1 }
 0xad2   :  { %1764 = vsyncpa [#allocation12], 1 }
 0xad3   :  { %1765 = vsyncpa [#allocation4], 1 }

</bundles_post_ra>
